<compile_context>
chip_gen: v7x
topology: tpu7x:2x2x1
jax: 0.10.0
libtpu: 0.0.40
codegen_flags: <defaults>
</compile_context>

<pallas_src>
import functools

import jax
import jax.numpy as jnp
from jax.experimental import pallas as pl
from jax.experimental.pallas import tpu as pltpu


# ----------------------------- hyperparameters ------------------------------
HIDDEN_DIM = 32          # args.hidden_dim
N_LAYERS = 2             # args.n_layers
N_TEST = 10              # args.n_test
N_QUESTIONS = 20         # args.n_questions
N_TAG = 5                # args.n_tag
BATCH = 2
SEQ = 8
EMB = HIDDEN_DIM // 3            # 10
EMB_CAT = 4 * EMB                # 40

# Set to jnp.bfloat16 on v6e/v7x for MXU-native operands (then relax the
# allclose tolerance in __main__ to ~2e-2). f32 keeps the strict check.
MXU_DTYPE = jnp.float32


# --------------------------------- kernel -----------------------------------
def lstm_model_kernel(x_ref,      # (S*B, E)    time-major embed
                      wc_ref,     # (E, H)      comb_proj weight, pre-transposed
                      bc_ref,     # (1, H)
                      wih_ref,    # (L, H, 4H)  pre-transposed
                      whh_ref,    # (L, H, 4H)  pre-transposed
                      b_ref,      # (L, 1, 4H)  bih + bhh, pre-summed on host
                      wfc_ref,    # (1, H)
                      bfc_ref,    # (1, 1)
                      out_ref,    # (S*B, 1)
                      hseq_ref,   # scratch VMEM (S*B, H)
                      *, batch, seq):
    B, S = batch, seq
    H = wc_ref.shape[1]
    L = wih_ref.shape[0]

    # ---- comb_proj: X = embed @ Wc + bc (time-major rows: t*B + b) --------
    X = jnp.dot(x_ref[...].astype(MXU_DTYPE), wc_ref[...],
                preferred_element_type=jnp.float32) + bc_ref[...]     # (S*B, H)

    # ---- multi-layer LSTM (batch_first, zero initial state) --------------
    cur = X
    for l in range(L):
        w_hh = whh_ref[l]                                             # (H, 4H)
        # Input-to-hidden projection for ALL timesteps at once, bias folded in.
        Gx = jnp.dot(cur.astype(MXU_DTYPE), wih_ref[l],
                     preferred_element_type=jnp.float32) + b_ref[l]   # (S*B, 4H)

        h = jnp.zeros((B, H), jnp.float32)
        c = jnp.zeros((B, H), jnp.float32)
        for t in range(S):                           # static unroll (S small)
            gates = Gx[t * B:(t + 1) * B, :] + jnp.dot(
                h.astype(MXU_DTYPE), w_hh, preferred_element_type=jnp.float32)
            sig = jax.nn.sigmoid(gates)              # one full-vreg EUP pass
            i_g = sig[:, 0 * H:1 * H]
            f_g = sig[:, 1 * H:2 * H]
            o_g = sig[:, 3 * H:4 * H]
            g_g = jnp.tanh(gates[:, 2 * H:3 * H])
            c = f_g * c + i_g * g_g
            h = o_g * jnp.tanh(c)
            hseq_ref[pl.ds(t * B, B), :] = h         # write step into scratch
        cur = hseq_ref[...]                          # (S*B, H) layer output

    # ---- fc + sigmoid: lane reduction instead of lane-width-1 matmul -----
    logits = jnp.sum(cur * wfc_ref[...], axis=-1, keepdims=True) + bfc_ref[...]
    out_ref[...] = jax.nn.sigmoid(logits)            # (S*B, 1)


def lstm_model_forward(embed, params):
    B, S, E = embed.shape
    H, L = HIDDEN_DIM, N_LAYERS

    # Host-side layout plumbing (free): time-major input, pre-transposed
    # weights, pre-summed biases.
    x_tm = jnp.transpose(embed, (1, 0, 2)).reshape(S * B, E)
    wc_t = params["wc"].T.astype(MXU_DTYPE)                              # (E, H)
    wih_t = jnp.transpose(params["wih"], (0, 2, 1)).astype(MXU_DTYPE)    # (L, H, 4H)
    whh_t = jnp.transpose(params["whh"], (0, 2, 1)).astype(MXU_DTYPE)    # (L, H, 4H)
    b_sum = (params["bih"] + params["bhh"])[:, None, :]                  # (L, 1, 4H)

    args = (x_tm, wc_t, params["bc"], wih_t, whh_t, b_sum,
            params["wfc"], params["bfc"])

    vmem = pl.BlockSpec(memory_space=pltpu.MemorySpace.VMEM)
    kernel = functools.partial(lstm_model_kernel, batch=B, seq=S)
    out = pl.pallas_call(
        kernel,
        out_shape=jax.ShapeDtypeStruct((S * B, 1), jnp.float32),
        in_specs=[vmem] * len(args),
        out_specs=vmem,
        scratch_shapes=[pltpu.VMEM((S * B, H), jnp.float32)],
    )(*args)

    # time-major flat (t*B + b) -> (B, S), matching torch .view(batch_size, -1)
    return out.reshape(S, B).T


# -------------------------- parameter construction --------------------------
def init_params(key):
    ks = jax.random.split(key, 16)
    H, E, L = HIDDEN_DIM, EMB_CAT, N_LAYERS
    scale = 0.1
    p = {
        # embedding tables
        "emb_interaction": scale * jax.random.normal(ks[0], (3, EMB), jnp.float32),
        "emb_test": scale * jax.random.normal(ks[1], (N_TEST + 1, EMB), jnp.float32),
        "emb_question": scale * jax.random.normal(ks[2], (N_QUESTIONS + 1, EMB), jnp.float32),
        "emb_tag": scale * jax.random.normal(ks[3], (N_TAG + 1, EMB), jnp.float32),
        # comb_proj: Linear(E -> H)  (PyTorch layout: (out, in))
        "wc": scale * jax.random.normal(ks[4], (H, E), jnp.float32),
        "bc": scale * jax.random.normal(ks[5], (1, H), jnp.float32),
        # LSTM weights, stacked over layers (input size == hidden size)
        "wih": scale * jax.random.normal(ks[6], (L, 4 * H, H), jnp.float32),
        "whh": scale * jax.random.normal(ks[7], (L, 4 * H, H), jnp.float32),
        "bih": scale * jax.random.normal(ks[8], (L, 4 * H), jnp.float32),
        "bhh": scale * jax.random.normal(ks[9], (L, 4 * H), jnp.float32),
        # fc: Linear(H -> 1)
        "wfc": scale * jax.random.normal(ks[10], (1, H), jnp.float32),
        "bfc": scale * jax.random.normal(ks[11], (1, 1), jnp.float32),
    }
    return p


def embed_inputs(params, test, question, tag, interaction):
    # glue: embedding gathers + concat (PyTorch: torch.cat([...], 2))
    e_int = params["emb_interaction"][interaction]
    e_tst = params["emb_test"][test]
    e_q = params["emb_question"][question]
    e_tag = params["emb_tag"][tag]
    return jnp.concatenate([e_int, e_tst, e_q, e_tag], axis=2).astype(jnp.float32)


# ----------------------------- pure-JAX reference ----------------------------
def reference_forward(embed, p):
    B, S, _ = embed.shape
    H = HIDDEN_DIM
    X = embed.reshape(B * S, -1) @ p["wc"].T + p["bc"]
    layer_in = X.reshape(B, S, H)
    for l in range(N_LAYERS):
        w_ih, w_hh = p["wih"][l], p["whh"][l]
        bias = p["bih"][l] + p["bhh"][l]
        h = jnp.zeros((B, H)); c = jnp.zeros((B, H))
        outs = []
        for t in range(S):
            g = layer_in[:, t, :] @ w_ih.T + h @ w_hh.T + bias
            i_g = jax.nn.sigmoid(g[:, :H])
            f_g = jax.nn.sigmoid(g[:, H:2 * H])
            g_g = jnp.tanh(g[:, 2 * H:3 * H])
            o_g = jax.nn.sigmoid(g[:, 3 * H:])
            c = f_g * c + i_g * g_g
            h = o_g * jnp.tanh(c)
            outs.append(h)
        layer_in = jnp.stack(outs, axis=1)
    logits = layer_in.reshape(B * S, H) @ p["wfc"].T + p["bfc"]
    return jax.nn.sigmoid(logits).reshape(B, S)


# ----------------------------------- main ------------------------------------
if __name__ == "__main__":
    key = jax.random.PRNGKey(0)
    kp, k1, k2, k3, k4, k5 = jax.random.split(key, 6)
    params = init_params(kp)

    # integer categorical inputs, shapes (B, S) — mirrors the torch tuple
    test = jax.random.randint(k1, (BATCH, SEQ), 0, N_TEST + 1)
    question = jax.random.randint(k2, (BATCH, SEQ), 0, N_QUESTIONS + 1)
    tag = jax.random.randint(k3, (BATCH, SEQ), 0, N_TAG + 1)
    mask = jnp.ones((BATCH, SEQ), jnp.int32)   # unused by forward (as in torch)
    interaction = jax.random.randint(k4, (BATCH, SEQ), 0, 3)

    embed = embed_inputs(params, test, question, tag, interaction)

    preds = lstm_model_forward(embed, params)
    preds = jax.block_until_ready(preds)

    ref = reference_forward(embed, params)
    assert preds.shape == (BATCH, SEQ)
    tol = 1e-4 if MXU_DTYPE == jnp.float32 else 2e-2
    assert jnp.allclose(preds, ref, atol=tol, rtol=tol), "mismatch vs reference"

    print("KERNEL_OK")
</pallas_src>

<mosaic_0001>
module attributes {stable_mosaic.version = 11 : i64} {
  func.func @lstm_model_kernel(%arg0: memref<16x40xf32, #tpu.memory_space<vmem>>, %arg1: memref<40x32xf32, #tpu.memory_space<vmem>>, %arg2: memref<1x32xf32, #tpu.memory_space<vmem>>, %arg3: memref<2x32x128xf32, #tpu.memory_space<vmem>>, %arg4: memref<2x32x128xf32, #tpu.memory_space<vmem>>, %arg5: memref<2x1x128xf32, #tpu.memory_space<vmem>>, %arg6: memref<1x32xf32, #tpu.memory_space<vmem>>, %arg7: memref<1x1xf32, #tpu.memory_space<vmem>>, %arg8: memref<16x1xf32, #tpu.memory_space<vmem>>, %arg9: memref<16x32xf32, #tpu.memory_space<vmem>>) attributes {dimension_semantics = [], scalar_prefetch = 0 : i64, scratch_operands = 1 : i64, tpu.core_type = #tpu.core_type<tc>} {
    %c0 = arith.constant 0 : index
    %c0_0 = arith.constant 0 : index
    %0 = vector.load %arg0[%c0, %c0_0] : memref<16x40xf32, #tpu.memory_space<vmem>>, vector<16x40xf32>
    %c0_1 = arith.constant 0 : index
    %c0_2 = arith.constant 0 : index
    %1 = vector.load %arg1[%c0_1, %c0_2] : memref<40x32xf32, #tpu.memory_space<vmem>>, vector<40x32xf32>
    %cst = arith.constant dense<0.000000e+00> : vector<16x32xf32>
    %2 = tpu.matmul %0, %1, %cst {dimension_numbers = #tpu.dot_dimension_numbers<[1], [0], [0], [1], [0, 0, 1, 1], [], []>} : vector<16x40xf32>, vector<40x32xf32>, vector<16x32xf32> -> vector<16x32xf32>
    %c0_3 = arith.constant 0 : index
    %c0_4 = arith.constant 0 : index
    %3 = vector.load %arg2[%c0_3, %c0_4] : memref<1x32xf32, #tpu.memory_space<vmem>>, vector<1x32xf32>
    %4 = vector.broadcast %3 : vector<1x32xf32> to vector<16x32xf32>
    %5 = arith.addf %2, %4 : vector<16x32xf32>
    %c0_5 = arith.constant 0 : index
    %c0_6 = arith.constant 0 : index
    %c0_7 = arith.constant 0 : index
    %6 = vector.load %arg4[%c0_5, %c0_6, %c0_7] : memref<2x32x128xf32, #tpu.memory_space<vmem>>, vector<1x32x128xf32>
    %7 = vector.shape_cast %6 : vector<1x32x128xf32> to vector<32x128xf32>
    %c0_8 = arith.constant 0 : index
    %c0_9 = arith.constant 0 : index
    %c0_10 = arith.constant 0 : index
    %8 = vector.load %arg3[%c0_8, %c0_9, %c0_10] : memref<2x32x128xf32, #tpu.memory_space<vmem>>, vector<1x32x128xf32>
    %9 = vector.shape_cast %8 : vector<1x32x128xf32> to vector<32x128xf32>
    %cst_11 = arith.constant dense<0.000000e+00> : vector<16x128xf32>
    %10 = tpu.matmul %5, %9, %cst_11 {dimension_numbers = #tpu.dot_dimension_numbers<[1], [0], [0], [1], [0, 0, 1, 1], [], []>} : vector<16x32xf32>, vector<32x128xf32>, vector<16x128xf32> -> vector<16x128xf32>
    %c0_12 = arith.constant 0 : index
    %c0_13 = arith.constant 0 : index
    %c0_14 = arith.constant 0 : index
    %11 = vector.load %arg5[%c0_12, %c0_13, %c0_14] : memref<2x1x128xf32, #tpu.memory_space<vmem>>, vector<1x1x128xf32>
    %12 = vector.shape_cast %11 : vector<1x1x128xf32> to vector<1x128xf32>
    %13 = vector.broadcast %12 : vector<1x128xf32> to vector<16x128xf32>
    %14 = arith.addf %10, %13 : vector<16x128xf32>
    %cst_15 = arith.constant 0.000000e+00 : f32
    %15 = vector.broadcast %cst_15 : f32 to vector<2x32xf32>
    %cst_16 = arith.constant 0.000000e+00 : f32
    %16 = vector.broadcast %cst_16 : f32 to vector<2x32xf32>
    %17 = vector.extract_strided_slice %14 {offsets = [0, 0], sizes = [2, 128], strides = [1, 1]} : vector<16x128xf32> to vector<2x128xf32>
    %cst_17 = arith.constant dense<0.000000e+00> : vector<2x128xf32>
    %18 = tpu.matmul %15, %7, %cst_17 {dimension_numbers = #tpu.dot_dimension_numbers<[1], [0], [0], [1], [0, 0, 1, 1], [], []>} : vector<2x32xf32>, vector<32x128xf32>, vector<2x128xf32> -> vector<2x128xf32>
    %19 = arith.addf %17, %18 : vector<2x128xf32>
    %20 = arith.negf %19 : vector<2x128xf32>
    %21 = math.exp %20 : vector<2x128xf32>
    %cst_18 = arith.constant 1.000000e+00 : f32
    %22 = vector.broadcast %cst_18 : f32 to vector<2x128xf32>
    %23 = arith.addf %22, %21 : vector<2x128xf32>
    %24 = arith.divf %22, %23 : vector<2x128xf32>
    %25 = vector.extract_strided_slice %24 {offsets = [0, 0], sizes = [2, 32], strides = [1, 1]} : vector<2x128xf32> to vector<2x32xf32>
    %26 = vector.extract_strided_slice %24 {offsets = [0, 32], sizes = [2, 32], strides = [1, 1]} : vector<2x128xf32> to vector<2x32xf32>
    %27 = vector.extract_strided_slice %24 {offsets = [0, 96], sizes = [2, 32], strides = [1, 1]} : vector<2x128xf32> to vector<2x32xf32>
    %28 = vector.extract_strided_slice %19 {offsets = [0, 64], sizes = [2, 32], strides = [1, 1]} : vector<2x128xf32> to vector<2x32xf32>
    %29 = math.tanh %28 : vector<2x32xf32>
    %30 = arith.mulf %26, %16 : vector<2x32xf32>
    %31 = arith.mulf %25, %29 : vector<2x32xf32>
    %32 = arith.addf %30, %31 : vector<2x32xf32>
    %33 = math.tanh %32 : vector<2x32xf32>
    %34 = arith.mulf %27, %33 : vector<2x32xf32>
    %c0_19 = arith.constant 0 : index
    %c0_20 = arith.constant 0 : index
    %35 = vector.load %arg9[%c0_19, %c0_20] : memref<16x32xf32, #tpu.memory_space<vmem>>, vector<2x32xf32>
    tpu.vector_store %arg9[%c0_19, %c0_20], %34 {strides = array<i32>} : memref<16x32xf32, #tpu.memory_space<vmem>>, vector<2x32xf32>,
    %36 = vector.extract_strided_slice %14 {offsets = [2, 0], sizes = [2, 128], strides = [1, 1]} : vector<16x128xf32> to vector<2x128xf32>
    %cst_21 = arith.constant dense<0.000000e+00> : vector<2x128xf32>
    %37 = tpu.matmul %34, %7, %cst_21 {dimension_numbers = #tpu.dot_dimension_numbers<[1], [0], [0], [1], [0, 0, 1, 1], [], []>} : vector<2x32xf32>, vector<32x128xf32>, vector<2x128xf32> -> vector<2x128xf32>
    %38 = arith.addf %36, %37 : vector<2x128xf32>
    %39 = arith.negf %38 : vector<2x128xf32>
    %40 = math.exp %39 : vector<2x128xf32>
    %cst_22 = arith.constant 1.000000e+00 : f32
    %41 = vector.broadcast %cst_22 : f32 to vector<2x128xf32>
    %42 = arith.addf %41, %40 : vector<2x128xf32>
    %43 = arith.divf %41, %42 : vector<2x128xf32>
    %44 = vector.extract_strided_slice %43 {offsets = [0, 0], sizes = [2, 32], strides = [1, 1]} : vector<2x128xf32> to vector<2x32xf32>
    %45 = vector.extract_strided_slice %43 {offsets = [0, 32], sizes = [2, 32], strides = [1, 1]} : vector<2x128xf32> to vector<2x32xf32>
    %46 = vector.extract_strided_slice %43 {offsets = [0, 96], sizes = [2, 32], strides = [1, 1]} : vector<2x128xf32> to vector<2x32xf32>
    %47 = vector.extract_strided_slice %38 {offsets = [0, 64], sizes = [2, 32], strides = [1, 1]} : vector<2x128xf32> to vector<2x32xf32>
    %48 = math.tanh %47 : vector<2x32xf32>
    %49 = arith.mulf %45, %32 : vector<2x32xf32>
    %50 = arith.mulf %44, %48 : vector<2x32xf32>
    %51 = arith.addf %49, %50 : vector<2x32xf32>
    %52 = math.tanh %51 : vector<2x32xf32>
    %53 = arith.mulf %46, %52 : vector<2x32xf32>
    %c2 = arith.constant 2 : index
    %c0_23 = arith.constant 0 : index
    %54 = vector.load %arg9[%c2, %c0_23] : memref<16x32xf32, #tpu.memory_space<vmem>>, vector<2x32xf32>
    tpu.vector_store %arg9[%c2, %c0_23], %53 {strides = array<i32>} : memref<16x32xf32, #tpu.memory_space<vmem>>, vector<2x32xf32>,
    %55 = vector.extract_strided_slice %14 {offsets = [4, 0], sizes = [2, 128], strides = [1, 1]} : vector<16x128xf32> to vector<2x128xf32>
    %cst_24 = arith.constant dense<0.000000e+00> : vector<2x128xf32>
    %56 = tpu.matmul %53, %7, %cst_24 {dimension_numbers = #tpu.dot_dimension_numbers<[1], [0], [0], [1], [0, 0, 1, 1], [], []>} : vector<2x32xf32>, vector<32x128xf32>, vector<2x128xf32> -> vector<2x128xf32>
    %57 = arith.addf %55, %56 : vector<2x128xf32>
    %58 = arith.negf %57 : vector<2x128xf32>
    %59 = math.exp %58 : vector<2x128xf32>
    %cst_25 = arith.constant 1.000000e+00 : f32
    %60 = vector.broadcast %cst_25 : f32 to vector<2x128xf32>
    %61 = arith.addf %60, %59 : vector<2x128xf32>
    %62 = arith.divf %60, %61 : vector<2x128xf32>
    %63 = vector.extract_strided_slice %62 {offsets = [0, 0], sizes = [2, 32], strides = [1, 1]} : vector<2x128xf32> to vector<2x32xf32>
    %64 = vector.extract_strided_slice %62 {offsets = [0, 32], sizes = [2, 32], strides = [1, 1]} : vector<2x128xf32> to vector<2x32xf32>
    %65 = vector.extract_strided_slice %62 {offsets = [0, 96], sizes = [2, 32], strides = [1, 1]} : vector<2x128xf32> to vector<2x32xf32>
    %66 = vector.extract_strided_slice %57 {offsets = [0, 64], sizes = [2, 32], strides = [1, 1]} : vector<2x128xf32> to vector<2x32xf32>
    %67 = math.tanh %66 : vector<2x32xf32>
    %68 = arith.mulf %64, %51 : vector<2x32xf32>
    %69 = arith.mulf %63, %67 : vector<2x32xf32>
    %70 = arith.addf %68, %69 : vector<2x32xf32>
    %71 = math.tanh %70 : vector<2x32xf32>
    %72 = arith.mulf %65, %71 : vector<2x32xf32>
    %c4 = arith.constant 4 : index
    %c0_26 = arith.constant 0 : index
    %73 = vector.load %arg9[%c4, %c0_26] : memref<16x32xf32, #tpu.memory_space<vmem>>, vector<2x32xf32>
    tpu.vector_store %arg9[%c4, %c0_26], %72 {strides = array<i32>} : memref<16x32xf32, #tpu.memory_space<vmem>>, vector<2x32xf32>,
    %74 = vector.extract_strided_slice %14 {offsets = [6, 0], sizes = [2, 128], strides = [1, 1]} : vector<16x128xf32> to vector<2x128xf32>
    %cst_27 = arith.constant dense<0.000000e+00> : vector<2x128xf32>
    %75 = tpu.matmul %72, %7, %cst_27 {dimension_numbers = #tpu.dot_dimension_numbers<[1], [0], [0], [1], [0, 0, 1, 1], [], []>} : vector<2x32xf32>, vector<32x128xf32>, vector<2x128xf32> -> vector<2x128xf32>
    %76 = arith.addf %74, %75 : vector<2x128xf32>
    %77 = arith.negf %76 : vector<2x128xf32>
    %78 = math.exp %77 : vector<2x128xf32>
    %cst_28 = arith.constant 1.000000e+00 : f32
    %79 = vector.broadcast %cst_28 : f32 to vector<2x128xf32>
    %80 = arith.addf %79, %78 : vector<2x128xf32>
    %81 = arith.divf %79, %80 : vector<2x128xf32>
    %82 = vector.extract_strided_slice %81 {offsets = [0, 0], sizes = [2, 32], strides = [1, 1]} : vector<2x128xf32> to vector<2x32xf32>
    %83 = vector.extract_strided_slice %81 {offsets = [0, 32], sizes = [2, 32], strides = [1, 1]} : vector<2x128xf32> to vector<2x32xf32>
    %84 = vector.extract_strided_slice %81 {offsets = [0, 96], sizes = [2, 32], strides = [1, 1]} : vector<2x128xf32> to vector<2x32xf32>
    %85 = vector.extract_strided_slice %76 {offsets = [0, 64], sizes = [2, 32], strides = [1, 1]} : vector<2x128xf32> to vector<2x32xf32>
    %86 = math.tanh %85 : vector<2x32xf32>
    %87 = arith.mulf %83, %70 : vector<2x32xf32>
    %88 = arith.mulf %82, %86 : vector<2x32xf32>
    %89 = arith.addf %87, %88 : vector<2x32xf32>
    %90 = math.tanh %89 : vector<2x32xf32>
    %91 = arith.mulf %84, %90 : vector<2x32xf32>
    %c6 = arith.constant 6 : index
    %c0_29 = arith.constant 0 : index
    %92 = vector.load %arg9[%c6, %c0_29] : memref<16x32xf32, #tpu.memory_space<vmem>>, vector<2x32xf32>
    tpu.vector_store %arg9[%c6, %c0_29], %91 {strides = array<i32>} : memref<16x32xf32, #tpu.memory_space<vmem>>, vector<2x32xf32>,
    %93 = vector.extract_strided_slice %14 {offsets = [8, 0], sizes = [2, 128], strides = [1, 1]} : vector<16x128xf32> to vector<2x128xf32>
    %cst_30 = arith.constant dense<0.000000e+00> : vector<2x128xf32>
    %94 = tpu.matmul %91, %7, %cst_30 {dimension_numbers = #tpu.dot_dimension_numbers<[1], [0], [0], [1], [0, 0, 1, 1], [], []>} : vector<2x32xf32>, vector<32x128xf32>, vector<2x128xf32> -> vector<2x128xf32>
    %95 = arith.addf %93, %94 : vector<2x128xf32>
    %96 = arith.negf %95 : vector<2x128xf32>
    %97 = math.exp %96 : vector<2x128xf32>
    %cst_31 = arith.constant 1.000000e+00 : f32
    %98 = vector.broadcast %cst_31 : f32 to vector<2x128xf32>
    %99 = arith.addf %98, %97 : vector<2x128xf32>
    %100 = arith.divf %98, %99 : vector<2x128xf32>
    %101 = vector.extract_strided_slice %100 {offsets = [0, 0], sizes = [2, 32], strides = [1, 1]} : vector<2x128xf32> to vector<2x32xf32>
    %102 = vector.extract_strided_slice %100 {offsets = [0, 32], sizes = [2, 32], strides = [1, 1]} : vector<2x128xf32> to vector<2x32xf32>
    %103 = vector.extract_strided_slice %100 {offsets = [0, 96], sizes = [2, 32], strides = [1, 1]} : vector<2x128xf32> to vector<2x32xf32>
    %104 = vector.extract_strided_slice %95 {offsets = [0, 64], sizes = [2, 32], strides = [1, 1]} : vector<2x128xf32> to vector<2x32xf32>
    %105 = math.tanh %104 : vector<2x32xf32>
    %106 = arith.mulf %102, %89 : vector<2x32xf32>
    %107 = arith.mulf %101, %105 : vector<2x32xf32>
    %108 = arith.addf %106, %107 : vector<2x32xf32>
    %109 = math.tanh %108 : vector<2x32xf32>
    %110 = arith.mulf %103, %109 : vector<2x32xf32>
    %c8 = arith.constant 8 : index
    %c0_32 = arith.constant 0 : index
    %111 = vector.load %arg9[%c8, %c0_32] : memref<16x32xf32, #tpu.memory_space<vmem>>, vector<2x32xf32>
    tpu.vector_store %arg9[%c8, %c0_32], %110 {strides = array<i32>} : memref<16x32xf32, #tpu.memory_space<vmem>>, vector<2x32xf32>,
    %112 = vector.extract_strided_slice %14 {offsets = [10, 0], sizes = [2, 128], strides = [1, 1]} : vector<16x128xf32> to vector<2x128xf32>
    %cst_33 = arith.constant dense<0.000000e+00> : vector<2x128xf32>
    %113 = tpu.matmul %110, %7, %cst_33 {dimension_numbers = #tpu.dot_dimension_numbers<[1], [0], [0], [1], [0, 0, 1, 1], [], []>} : vector<2x32xf32>, vector<32x128xf32>, vector<2x128xf32> -> vector<2x128xf32>
    %114 = arith.addf %112, %113 : vector<2x128xf32>
    %115 = arith.negf %114 : vector<2x128xf32>
    %116 = math.exp %115 : vector<2x128xf32>
    %cst_34 = arith.constant 1.000000e+00 : f32
    %117 = vector.broadcast %cst_34 : f32 to vector<2x128xf32>
    %118 = arith.addf %117, %116 : vector<2x128xf32>
    %119 = arith.divf %117, %118 : vector<2x128xf32>
    %120 = vector.extract_strided_slice %119 {offsets = [0, 0], sizes = [2, 32], strides = [1, 1]} : vector<2x128xf32> to vector<2x32xf32>
    %121 = vector.extract_strided_slice %119 {offsets = [0, 32], sizes = [2, 32], strides = [1, 1]} : vector<2x128xf32> to vector<2x32xf32>
    %122 = vector.extract_strided_slice %119 {offsets = [0, 96], sizes = [2, 32], strides = [1, 1]} : vector<2x128xf32> to vector<2x32xf32>
    %123 = vector.extract_strided_slice %114 {offsets = [0, 64], sizes = [2, 32], strides = [1, 1]} : vector<2x128xf32> to vector<2x32xf32>
    %124 = math.tanh %123 : vector<2x32xf32>
    %125 = arith.mulf %121, %108 : vector<2x32xf32>
    %126 = arith.mulf %120, %124 : vector<2x32xf32>
    %127 = arith.addf %125, %126 : vector<2x32xf32>
    %128 = math.tanh %127 : vector<2x32xf32>
    %129 = arith.mulf %122, %128 : vector<2x32xf32>
    %c10 = arith.constant 10 : index
    %c0_35 = arith.constant 0 : index
    %130 = vector.load %arg9[%c10, %c0_35] : memref<16x32xf32, #tpu.memory_space<vmem>>, vector<2x32xf32>
    tpu.vector_store %arg9[%c10, %c0_35], %129 {strides = array<i32>} : memref<16x32xf32, #tpu.memory_space<vmem>>, vector<2x32xf32>,
    %131 = vector.extract_strided_slice %14 {offsets = [12, 0], sizes = [2, 128], strides = [1, 1]} : vector<16x128xf32> to vector<2x128xf32>
    %cst_36 = arith.constant dense<0.000000e+00> : vector<2x128xf32>
    %132 = tpu.matmul %129, %7, %cst_36 {dimension_numbers = #tpu.dot_dimension_numbers<[1], [0], [0], [1], [0, 0, 1, 1], [], []>} : vector<2x32xf32>, vector<32x128xf32>, vector<2x128xf32> -> vector<2x128xf32>
    %133 = arith.addf %131, %132 : vector<2x128xf32>
    %134 = arith.negf %133 : vector<2x128xf32>
    %135 = math.exp %134 : vector<2x128xf32>
    %cst_37 = arith.constant 1.000000e+00 : f32
    %136 = vector.broadcast %cst_37 : f32 to vector<2x128xf32>
    %137 = arith.addf %136, %135 : vector<2x128xf32>
    %138 = arith.divf %136, %137 : vector<2x128xf32>
    %139 = vector.extract_strided_slice %138 {offsets = [0, 0], sizes = [2, 32], strides = [1, 1]} : vector<2x128xf32> to vector<2x32xf32>
    %140 = vector.extract_strided_slice %138 {offsets = [0, 32], sizes = [2, 32], strides = [1, 1]} : vector<2x128xf32> to vector<2x32xf32>
    %141 = vector.extract_strided_slice %138 {offsets = [0, 96], sizes = [2, 32], strides = [1, 1]} : vector<2x128xf32> to vector<2x32xf32>
    %142 = vector.extract_strided_slice %133 {offsets = [0, 64], sizes = [2, 32], strides = [1, 1]} : vector<2x128xf32> to vector<2x32xf32>
    %143 = math.tanh %142 : vector<2x32xf32>
    %144 = arith.mulf %140, %127 : vector<2x32xf32>
    %145 = arith.mulf %139, %143 : vector<2x32xf32>
    %146 = arith.addf %144, %145 : vector<2x32xf32>
    %147 = math.tanh %146 : vector<2x32xf32>
    %148 = arith.mulf %141, %147 : vector<2x32xf32>
    %c12 = arith.constant 12 : index
    %c0_38 = arith.constant 0 : index
    %149 = vector.load %arg9[%c12, %c0_38] : memref<16x32xf32, #tpu.memory_space<vmem>>, vector<2x32xf32>
    tpu.vector_store %arg9[%c12, %c0_38], %148 {strides = array<i32>} : memref<16x32xf32, #tpu.memory_space<vmem>>, vector<2x32xf32>,
    %150 = vector.extract_strided_slice %14 {offsets = [14, 0], sizes = [2, 128], strides = [1, 1]} : vector<16x128xf32> to vector<2x128xf32>
    %cst_39 = arith.constant dense<0.000000e+00> : vector<2x128xf32>
    %151 = tpu.matmul %148, %7, %cst_39 {dimension_numbers = #tpu.dot_dimension_numbers<[1], [0], [0], [1], [0, 0, 1, 1], [], []>} : vector<2x32xf32>, vector<32x128xf32>, vector<2x128xf32> -> vector<2x128xf32>
    %152 = arith.addf %150, %151 : vector<2x128xf32>
    %153 = arith.negf %152 : vector<2x128xf32>
    %154 = math.exp %153 : vector<2x128xf32>
    %cst_40 = arith.constant 1.000000e+00 : f32
    %155 = vector.broadcast %cst_40 : f32 to vector<2x128xf32>
    %156 = arith.addf %155, %154 : vector<2x128xf32>
    %157 = arith.divf %155, %156 : vector<2x128xf32>
    %158 = vector.extract_strided_slice %157 {offsets = [0, 0], sizes = [2, 32], strides = [1, 1]} : vector<2x128xf32> to vector<2x32xf32>
    %159 = vector.extract_strided_slice %157 {offsets = [0, 32], sizes = [2, 32], strides = [1, 1]} : vector<2x128xf32> to vector<2x32xf32>
    %160 = vector.extract_strided_slice %157 {offsets = [0, 96], sizes = [2, 32], strides = [1, 1]} : vector<2x128xf32> to vector<2x32xf32>
    %161 = vector.extract_strided_slice %152 {offsets = [0, 64], sizes = [2, 32], strides = [1, 1]} : vector<2x128xf32> to vector<2x32xf32>
    %162 = math.tanh %161 : vector<2x32xf32>
    %163 = arith.mulf %159, %146 : vector<2x32xf32>
    %164 = arith.mulf %158, %162 : vector<2x32xf32>
    %165 = arith.addf %163, %164 : vector<2x32xf32>
    %166 = math.tanh %165 : vector<2x32xf32>
    %167 = arith.mulf %160, %166 : vector<2x32xf32>
    %c14 = arith.constant 14 : index
    %c0_41 = arith.constant 0 : index
    %168 = vector.load %arg9[%c14, %c0_41] : memref<16x32xf32, #tpu.memory_space<vmem>>, vector<2x32xf32>
    tpu.vector_store %arg9[%c14, %c0_41], %167 {strides = array<i32>} : memref<16x32xf32, #tpu.memory_space<vmem>>, vector<2x32xf32>,
    %c0_42 = arith.constant 0 : index
    %c0_43 = arith.constant 0 : index
    %169 = vector.load %arg9[%c0_42, %c0_43] : memref<16x32xf32, #tpu.memory_space<vmem>>, vector<16x32xf32>
    %c1 = arith.constant 1 : index
    %c0_44 = arith.constant 0 : index
    %c0_45 = arith.constant 0 : index
    %170 = vector.load %arg4[%c1, %c0_44, %c0_45] : memref<2x32x128xf32, #tpu.memory_space<vmem>>, vector<1x32x128xf32>
    %171 = vector.shape_cast %170 : vector<1x32x128xf32> to vector<32x128xf32>
    %c1_46 = arith.constant 1 : index
    %c0_47 = arith.constant 0 : index
    %c0_48 = arith.constant 0 : index
    %172 = vector.load %arg3[%c1_46, %c0_47, %c0_48] : memref<2x32x128xf32, #tpu.memory_space<vmem>>, vector<1x32x128xf32>
    %173 = vector.shape_cast %172 : vector<1x32x128xf32> to vector<32x128xf32>
    %cst_49 = arith.constant dense<0.000000e+00> : vector<16x128xf32>
    %174 = tpu.matmul %169, %173, %cst_49 {dimension_numbers = #tpu.dot_dimension_numbers<[1], [0], [0], [1], [0, 0, 1, 1], [], []>} : vector<16x32xf32>, vector<32x128xf32>, vector<16x128xf32> -> vector<16x128xf32>
    %c1_50 = arith.constant 1 : index
    %c0_51 = arith.constant 0 : index
    %c0_52 = arith.constant 0 : index
    %175 = vector.load %arg5[%c1_50, %c0_51, %c0_52] : memref<2x1x128xf32, #tpu.memory_space<vmem>>, vector<1x1x128xf32>
    %176 = vector.shape_cast %175 : vector<1x1x128xf32> to vector<1x128xf32>
    %177 = vector.broadcast %176 : vector<1x128xf32> to vector<16x128xf32>
    %178 = arith.addf %174, %177 : vector<16x128xf32>
    %cst_53 = arith.constant 0.000000e+00 : f32
    %179 = vector.broadcast %cst_53 : f32 to vector<2x32xf32>
    %cst_54 = arith.constant 0.000000e+00 : f32
    %180 = vector.broadcast %cst_54 : f32 to vector<2x32xf32>
    %181 = vector.extract_strided_slice %178 {offsets = [0, 0], sizes = [2, 128], strides = [1, 1]} : vector<16x128xf32> to vector<2x128xf32>
    %cst_55 = arith.constant dense<0.000000e+00> : vector<2x128xf32>
    %182 = tpu.matmul %179, %171, %cst_55 {dimension_numbers = #tpu.dot_dimension_numbers<[1], [0], [0], [1], [0, 0, 1, 1], [], []>} : vector<2x32xf32>, vector<32x128xf32>, vector<2x128xf32> -> vector<2x128xf32>
    %183 = arith.addf %181, %182 : vector<2x128xf32>
    %184 = arith.negf %183 : vector<2x128xf32>
    %185 = math.exp %184 : vector<2x128xf32>
    %cst_56 = arith.constant 1.000000e+00 : f32
    %186 = vector.broadcast %cst_56 : f32 to vector<2x128xf32>
    %187 = arith.addf %186, %185 : vector<2x128xf32>
    %188 = arith.divf %186, %187 : vector<2x128xf32>
    %189 = vector.extract_strided_slice %188 {offsets = [0, 0], sizes = [2, 32], strides = [1, 1]} : vector<2x128xf32> to vector<2x32xf32>
    %190 = vector.extract_strided_slice %188 {offsets = [0, 32], sizes = [2, 32], strides = [1, 1]} : vector<2x128xf32> to vector<2x32xf32>
    %191 = vector.extract_strided_slice %188 {offsets = [0, 96], sizes = [2, 32], strides = [1, 1]} : vector<2x128xf32> to vector<2x32xf32>
    %192 = vector.extract_strided_slice %183 {offsets = [0, 64], sizes = [2, 32], strides = [1, 1]} : vector<2x128xf32> to vector<2x32xf32>
    %193 = math.tanh %192 : vector<2x32xf32>
    %194 = arith.mulf %190, %180 : vector<2x32xf32>
    %195 = arith.mulf %189, %193 : vector<2x32xf32>
    %196 = arith.addf %194, %195 : vector<2x32xf32>
    %197 = math.tanh %196 : vector<2x32xf32>
    %198 = arith.mulf %191, %197 : vector<2x32xf32>
    %c0_57 = arith.constant 0 : index
    %c0_58 = arith.constant 0 : index
    %199 = vector.load %arg9[%c0_57, %c0_58] : memref<16x32xf32, #tpu.memory_space<vmem>>, vector<2x32xf32>
    tpu.vector_store %arg9[%c0_57, %c0_58], %198 {strides = array<i32>} : memref<16x32xf32, #tpu.memory_space<vmem>>, vector<2x32xf32>,
    %200 = vector.extract_strided_slice %178 {offsets = [2, 0], sizes = [2, 128], strides = [1, 1]} : vector<16x128xf32> to vector<2x128xf32>
    %cst_59 = arith.constant dense<0.000000e+00> : vector<2x128xf32>
    %201 = tpu.matmul %198, %171, %cst_59 {dimension_numbers = #tpu.dot_dimension_numbers<[1], [0], [0], [1], [0, 0, 1, 1], [], []>} : vector<2x32xf32>, vector<32x128xf32>, vector<2x128xf32> -> vector<2x128xf32>
    %202 = arith.addf %200, %201 : vector<2x128xf32>
    %203 = arith.negf %202 : vector<2x128xf32>
    %204 = math.exp %203 : vector<2x128xf32>
    %cst_60 = arith.constant 1.000000e+00 : f32
    %205 = vector.broadcast %cst_60 : f32 to vector<2x128xf32>
    %206 = arith.addf %205, %204 : vector<2x128xf32>
    %207 = arith.divf %205, %206 : vector<2x128xf32>
    %208 = vector.extract_strided_slice %207 {offsets = [0, 0], sizes = [2, 32], strides = [1, 1]} : vector<2x128xf32> to vector<2x32xf32>
    %209 = vector.extract_strided_slice %207 {offsets = [0, 32], sizes = [2, 32], strides = [1, 1]} : vector<2x128xf32> to vector<2x32xf32>
    %210 = vector.extract_strided_slice %207 {offsets = [0, 96], sizes = [2, 32], strides = [1, 1]} : vector<2x128xf32> to vector<2x32xf32>
    %211 = vector.extract_strided_slice %202 {offsets = [0, 64], sizes = [2, 32], strides = [1, 1]} : vector<2x128xf32> to vector<2x32xf32>
    %212 = math.tanh %211 : vector<2x32xf32>
    %213 = arith.mulf %209, %196 : vector<2x32xf32>
    %214 = arith.mulf %208, %212 : vector<2x32xf32>
    %215 = arith.addf %213, %214 : vector<2x32xf32>
    %216 = math.tanh %215 : vector<2x32xf32>
    %217 = arith.mulf %210, %216 : vector<2x32xf32>
    %c2_61 = arith.constant 2 : index
    %c0_62 = arith.constant 0 : index
    %218 = vector.load %arg9[%c2_61, %c0_62] : memref<16x32xf32, #tpu.memory_space<vmem>>, vector<2x32xf32>
    tpu.vector_store %arg9[%c2_61, %c0_62], %217 {strides = array<i32>} : memref<16x32xf32, #tpu.memory_space<vmem>>, vector<2x32xf32>,
    %219 = vector.extract_strided_slice %178 {offsets = [4, 0], sizes = [2, 128], strides = [1, 1]} : vector<16x128xf32> to vector<2x128xf32>
    %cst_63 = arith.constant dense<0.000000e+00> : vector<2x128xf32>
    %220 = tpu.matmul %217, %171, %cst_63 {dimension_numbers = #tpu.dot_dimension_numbers<[1], [0], [0], [1], [0, 0, 1, 1], [], []>} : vector<2x32xf32>, vector<32x128xf32>, vector<2x128xf32> -> vector<2x128xf32>
    %221 = arith.addf %219, %220 : vector<2x128xf32>
    %222 = arith.negf %221 : vector<2x128xf32>
    %223 = math.exp %222 : vector<2x128xf32>
    %cst_64 = arith.constant 1.000000e+00 : f32
    %224 = vector.broadcast %cst_64 : f32 to vector<2x128xf32>
    %225 = arith.addf %224, %223 : vector<2x128xf32>
    %226 = arith.divf %224, %225 : vector<2x128xf32>
    %227 = vector.extract_strided_slice %226 {offsets = [0, 0], sizes = [2, 32], strides = [1, 1]} : vector<2x128xf32> to vector<2x32xf32>
    %228 = vector.extract_strided_slice %226 {offsets = [0, 32], sizes = [2, 32], strides = [1, 1]} : vector<2x128xf32> to vector<2x32xf32>
    %229 = vector.extract_strided_slice %226 {offsets = [0, 96], sizes = [2, 32], strides = [1, 1]} : vector<2x128xf32> to vector<2x32xf32>
    %230 = vector.extract_strided_slice %221 {offsets = [0, 64], sizes = [2, 32], strides = [1, 1]} : vector<2x128xf32> to vector<2x32xf32>
    %231 = math.tanh %230 : vector<2x32xf32>
    %232 = arith.mulf %228, %215 : vector<2x32xf32>
    %233 = arith.mulf %227, %231 : vector<2x32xf32>
    %234 = arith.addf %232, %233 : vector<2x32xf32>
    %235 = math.tanh %234 : vector<2x32xf32>
    %236 = arith.mulf %229, %235 : vector<2x32xf32>
    %c4_65 = arith.constant 4 : index
    %c0_66 = arith.constant 0 : index
    %237 = vector.load %arg9[%c4_65, %c0_66] : memref<16x32xf32, #tpu.memory_space<vmem>>, vector<2x32xf32>
    tpu.vector_store %arg9[%c4_65, %c0_66], %236 {strides = array<i32>} : memref<16x32xf32, #tpu.memory_space<vmem>>, vector<2x32xf32>,
    %238 = vector.extract_strided_slice %178 {offsets = [6, 0], sizes = [2, 128], strides = [1, 1]} : vector<16x128xf32> to vector<2x128xf32>
    %cst_67 = arith.constant dense<0.000000e+00> : vector<2x128xf32>
    %239 = tpu.matmul %236, %171, %cst_67 {dimension_numbers = #tpu.dot_dimension_numbers<[1], [0], [0], [1], [0, 0, 1, 1], [], []>} : vector<2x32xf32>, vector<32x128xf32>, vector<2x128xf32> -> vector<2x128xf32>
    %240 = arith.addf %238, %239 : vector<2x128xf32>
    %241 = arith.negf %240 : vector<2x128xf32>
    %242 = math.exp %241 : vector<2x128xf32>
    %cst_68 = arith.constant 1.000000e+00 : f32
    %243 = vector.broadcast %cst_68 : f32 to vector<2x128xf32>
    %244 = arith.addf %243, %242 : vector<2x128xf32>
    %245 = arith.divf %243, %244 : vector<2x128xf32>
    %246 = vector.extract_strided_slice %245 {offsets = [0, 0], sizes = [2, 32], strides = [1, 1]} : vector<2x128xf32> to vector<2x32xf32>
    %247 = vector.extract_strided_slice %245 {offsets = [0, 32], sizes = [2, 32], strides = [1, 1]} : vector<2x128xf32> to vector<2x32xf32>
    %248 = vector.extract_strided_slice %245 {offsets = [0, 96], sizes = [2, 32], strides = [1, 1]} : vector<2x128xf32> to vector<2x32xf32>
    %249 = vector.extract_strided_slice %240 {offsets = [0, 64], sizes = [2, 32], strides = [1, 1]} : vector<2x128xf32> to vector<2x32xf32>
    %250 = math.tanh %249 : vector<2x32xf32>
    %251 = arith.mulf %247, %234 : vector<2x32xf32>
    %252 = arith.mulf %246, %250 : vector<2x32xf32>
    %253 = arith.addf %251, %252 : vector<2x32xf32>
    %254 = math.tanh %253 : vector<2x32xf32>
    %255 = arith.mulf %248, %254 : vector<2x32xf32>
    %c6_69 = arith.constant 6 : index
    %c0_70 = arith.constant 0 : index
    %256 = vector.load %arg9[%c6_69, %c0_70] : memref<16x32xf32, #tpu.memory_space<vmem>>, vector<2x32xf32>
    tpu.vector_store %arg9[%c6_69, %c0_70], %255 {strides = array<i32>} : memref<16x32xf32, #tpu.memory_space<vmem>>, vector<2x32xf32>,
    %257 = vector.extract_strided_slice %178 {offsets = [8, 0], sizes = [2, 128], strides = [1, 1]} : vector<16x128xf32> to vector<2x128xf32>
    %cst_71 = arith.constant dense<0.000000e+00> : vector<2x128xf32>
    %258 = tpu.matmul %255, %171, %cst_71 {dimension_numbers = #tpu.dot_dimension_numbers<[1], [0], [0], [1], [0, 0, 1, 1], [], []>} : vector<2x32xf32>, vector<32x128xf32>, vector<2x128xf32> -> vector<2x128xf32>
    %259 = arith.addf %257, %258 : vector<2x128xf32>
    %260 = arith.negf %259 : vector<2x128xf32>
    %261 = math.exp %260 : vector<2x128xf32>
    %cst_72 = arith.constant 1.000000e+00 : f32
    %262 = vector.broadcast %cst_72 : f32 to vector<2x128xf32>
    %263 = arith.addf %262, %261 : vector<2x128xf32>
    %264 = arith.divf %262, %263 : vector<2x128xf32>
    %265 = vector.extract_strided_slice %264 {offsets = [0, 0], sizes = [2, 32], strides = [1, 1]} : vector<2x128xf32> to vector<2x32xf32>
    %266 = vector.extract_strided_slice %264 {offsets = [0, 32], sizes = [2, 32], strides = [1, 1]} : vector<2x128xf32> to vector<2x32xf32>
    %267 = vector.extract_strided_slice %264 {offsets = [0, 96], sizes = [2, 32], strides = [1, 1]} : vector<2x128xf32> to vector<2x32xf32>
    %268 = vector.extract_strided_slice %259 {offsets = [0, 64], sizes = [2, 32], strides = [1, 1]} : vector<2x128xf32> to vector<2x32xf32>
    %269 = math.tanh %268 : vector<2x32xf32>
    %270 = arith.mulf %266, %253 : vector<2x32xf32>
    %271 = arith.mulf %265, %269 : vector<2x32xf32>
    %272 = arith.addf %270, %271 : vector<2x32xf32>
    %273 = math.tanh %272 : vector<2x32xf32>
    %274 = arith.mulf %267, %273 : vector<2x32xf32>
    %c8_73 = arith.constant 8 : index
    %c0_74 = arith.constant 0 : index
    %275 = vector.load %arg9[%c8_73, %c0_74] : memref<16x32xf32, #tpu.memory_space<vmem>>, vector<2x32xf32>
    tpu.vector_store %arg9[%c8_73, %c0_74], %274 {strides = array<i32>} : memref<16x32xf32, #tpu.memory_space<vmem>>, vector<2x32xf32>,
    %276 = vector.extract_strided_slice %178 {offsets = [10, 0], sizes = [2, 128], strides = [1, 1]} : vector<16x128xf32> to vector<2x128xf32>
    %cst_75 = arith.constant dense<0.000000e+00> : vector<2x128xf32>
    %277 = tpu.matmul %274, %171, %cst_75 {dimension_numbers = #tpu.dot_dimension_numbers<[1], [0], [0], [1], [0, 0, 1, 1], [], []>} : vector<2x32xf32>, vector<32x128xf32>, vector<2x128xf32> -> vector<2x128xf32>
    %278 = arith.addf %276, %277 : vector<2x128xf32>
    %279 = arith.negf %278 : vector<2x128xf32>
    %280 = math.exp %279 : vector<2x128xf32>
    %cst_76 = arith.constant 1.000000e+00 : f32
    %281 = vector.broadcast %cst_76 : f32 to vector<2x128xf32>
    %282 = arith.addf %281, %280 : vector<2x128xf32>
    %283 = arith.divf %281, %282 : vector<2x128xf32>
    %284 = vector.extract_strided_slice %283 {offsets = [0, 0], sizes = [2, 32], strides = [1, 1]} : vector<2x128xf32> to vector<2x32xf32>
    %285 = vector.extract_strided_slice %283 {offsets = [0, 32], sizes = [2, 32], strides = [1, 1]} : vector<2x128xf32> to vector<2x32xf32>
    %286 = vector.extract_strided_slice %283 {offsets = [0, 96], sizes = [2, 32], strides = [1, 1]} : vector<2x128xf32> to vector<2x32xf32>
    %287 = vector.extract_strided_slice %278 {offsets = [0, 64], sizes = [2, 32], strides = [1, 1]} : vector<2x128xf32> to vector<2x32xf32>
    %288 = math.tanh %287 : vector<2x32xf32>
    %289 = arith.mulf %285, %272 : vector<2x32xf32>
    %290 = arith.mulf %284, %288 : vector<2x32xf32>
    %291 = arith.addf %289, %290 : vector<2x32xf32>
    %292 = math.tanh %291 : vector<2x32xf32>
    %293 = arith.mulf %286, %292 : vector<2x32xf32>
    %c10_77 = arith.constant 10 : index
    %c0_78 = arith.constant 0 : index
    %294 = vector.load %arg9[%c10_77, %c0_78] : memref<16x32xf32, #tpu.memory_space<vmem>>, vector<2x32xf32>
    tpu.vector_store %arg9[%c10_77, %c0_78], %293 {strides = array<i32>} : memref<16x32xf32, #tpu.memory_space<vmem>>, vector<2x32xf32>,
    %295 = vector.extract_strided_slice %178 {offsets = [12, 0], sizes = [2, 128], strides = [1, 1]} : vector<16x128xf32> to vector<2x128xf32>
    %cst_79 = arith.constant dense<0.000000e+00> : vector<2x128xf32>
    %296 = tpu.matmul %293, %171, %cst_79 {dimension_numbers = #tpu.dot_dimension_numbers<[1], [0], [0], [1], [0, 0, 1, 1], [], []>} : vector<2x32xf32>, vector<32x128xf32>, vector<2x128xf32> -> vector<2x128xf32>
    %297 = arith.addf %295, %296 : vector<2x128xf32>
    %298 = arith.negf %297 : vector<2x128xf32>
    %299 = math.exp %298 : vector<2x128xf32>
    %cst_80 = arith.constant 1.000000e+00 : f32
    %300 = vector.broadcast %cst_80 : f32 to vector<2x128xf32>
    %301 = arith.addf %300, %299 : vector<2x128xf32>
    %302 = arith.divf %300, %301 : vector<2x128xf32>
    %303 = vector.extract_strided_slice %302 {offsets = [0, 0], sizes = [2, 32], strides = [1, 1]} : vector<2x128xf32> to vector<2x32xf32>
    %304 = vector.extract_strided_slice %302 {offsets = [0, 32], sizes = [2, 32], strides = [1, 1]} : vector<2x128xf32> to vector<2x32xf32>
    %305 = vector.extract_strided_slice %302 {offsets = [0, 96], sizes = [2, 32], strides = [1, 1]} : vector<2x128xf32> to vector<2x32xf32>
    %306 = vector.extract_strided_slice %297 {offsets = [0, 64], sizes = [2, 32], strides = [1, 1]} : vector<2x128xf32> to vector<2x32xf32>
    %307 = math.tanh %306 : vector<2x32xf32>
    %308 = arith.mulf %304, %291 : vector<2x32xf32>
    %309 = arith.mulf %303, %307 : vector<2x32xf32>
    %310 = arith.addf %308, %309 : vector<2x32xf32>
    %311 = math.tanh %310 : vector<2x32xf32>
    %312 = arith.mulf %305, %311 : vector<2x32xf32>
    %c12_81 = arith.constant 12 : index
    %c0_82 = arith.constant 0 : index
    %313 = vector.load %arg9[%c12_81, %c0_82] : memref<16x32xf32, #tpu.memory_space<vmem>>, vector<2x32xf32>
    tpu.vector_store %arg9[%c12_81, %c0_82], %312 {strides = array<i32>} : memref<16x32xf32, #tpu.memory_space<vmem>>, vector<2x32xf32>,
    %314 = vector.extract_strided_slice %178 {offsets = [14, 0], sizes = [2, 128], strides = [1, 1]} : vector<16x128xf32> to vector<2x128xf32>
    %cst_83 = arith.constant dense<0.000000e+00> : vector<2x128xf32>
    %315 = tpu.matmul %312, %171, %cst_83 {dimension_numbers = #tpu.dot_dimension_numbers<[1], [0], [0], [1], [0, 0, 1, 1], [], []>} : vector<2x32xf32>, vector<32x128xf32>, vector<2x128xf32> -> vector<2x128xf32>
    %316 = arith.addf %314, %315 : vector<2x128xf32>
    %317 = arith.negf %316 : vector<2x128xf32>
    %318 = math.exp %317 : vector<2x128xf32>
    %cst_84 = arith.constant 1.000000e+00 : f32
    %319 = vector.broadcast %cst_84 : f32 to vector<2x128xf32>
    %320 = arith.addf %319, %318 : vector<2x128xf32>
    %321 = arith.divf %319, %320 : vector<2x128xf32>
    %322 = vector.extract_strided_slice %321 {offsets = [0, 0], sizes = [2, 32], strides = [1, 1]} : vector<2x128xf32> to vector<2x32xf32>
    %323 = vector.extract_strided_slice %321 {offsets = [0, 32], sizes = [2, 32], strides = [1, 1]} : vector<2x128xf32> to vector<2x32xf32>
    %324 = vector.extract_strided_slice %321 {offsets = [0, 96], sizes = [2, 32], strides = [1, 1]} : vector<2x128xf32> to vector<2x32xf32>
    %325 = vector.extract_strided_slice %316 {offsets = [0, 64], sizes = [2, 32], strides = [1, 1]} : vector<2x128xf32> to vector<2x32xf32>
    %326 = math.tanh %325 : vector<2x32xf32>
    %327 = arith.mulf %323, %310 : vector<2x32xf32>
    %328 = arith.mulf %322, %326 : vector<2x32xf32>
    %329 = arith.addf %327, %328 : vector<2x32xf32>
    %330 = math.tanh %329 : vector<2x32xf32>
    %331 = arith.mulf %324, %330 : vector<2x32xf32>
    %c14_85 = arith.constant 14 : index
    %c0_86 = arith.constant 0 : index
    %332 = vector.load %arg9[%c14_85, %c0_86] : memref<16x32xf32, #tpu.memory_space<vmem>>, vector<2x32xf32>
    tpu.vector_store %arg9[%c14_85, %c0_86], %331 {strides = array<i32>} : memref<16x32xf32, #tpu.memory_space<vmem>>, vector<2x32xf32>,
    %c0_87 = arith.constant 0 : index
    %c0_88 = arith.constant 0 : index
    %333 = vector.load %arg9[%c0_87, %c0_88] : memref<16x32xf32, #tpu.memory_space<vmem>>, vector<16x32xf32>
    %c0_89 = arith.constant 0 : index
    %c0_90 = arith.constant 0 : index
    %334 = vector.load %arg6[%c0_89, %c0_90] : memref<1x32xf32, #tpu.memory_space<vmem>>, vector<1x32xf32>
    %335 = vector.broadcast %334 : vector<1x32xf32> to vector<16x32xf32>
    %336 = arith.mulf %333, %335 : vector<16x32xf32>
    %cst_91 = arith.constant dense<0.000000e+00> : vector<16xf32>
    %337 = vector.multi_reduction <add>, %336, %cst_91 [1] : vector<16x32xf32> to vector<16xf32>
    %338 = vector.shape_cast %337 : vector<16xf32> to vector<16x1xf32>
    %c0_92 = arith.constant 0 : index
    %c0_93 = arith.constant 0 : index
    %339 = vector.load %arg7[%c0_92, %c0_93] : memref<1x1xf32, #tpu.memory_space<vmem>>, vector<1x1xf32>
    %340 = vector.broadcast %339 : vector<1x1xf32> to vector<16x1xf32>
    %341 = arith.addf %338, %340 : vector<16x1xf32>
    %342 = arith.negf %341 : vector<16x1xf32>
    %343 = math.exp %342 : vector<16x1xf32>
    %cst_94 = arith.constant 1.000000e+00 : f32
    %344 = vector.broadcast %cst_94 : f32 to vector<16x1xf32>
    %345 = arith.addf %344, %343 : vector<16x1xf32>
    %346 = arith.divf %344, %345 : vector<16x1xf32>
    %c0_95 = arith.constant 0 : index
    %c0_96 = arith.constant 0 : index
    %347 = vector.load %arg8[%c0_95, %c0_96] : memref<16x1xf32, #tpu.memory_space<vmem>>, vector<16x1xf32>
    tpu.vector_store %arg8[%c0_95, %c0_96], %346 {strides = array<i32>} : memref<16x1xf32, #tpu.memory_space<vmem>>, vector<16x1xf32>,
    return
  }
}

</mosaic_0001>

<bundles_post_ra>
// kernel: tpu_custom_call.1
= control target key start
LH: loop header
LB: loop body
LE: loop exit
PB: predicated region body
PF: predicated region fallthrough
CT: control target
= control target key end

     0   :  { %s3179_s0 = inlined_call_operand.vmem [shape: f32[16,40], index: 0, kind: input, shape index: {}]   ;;  %s3180_s1 = inlined_call_operand.vmem [shape: f32[40,32], index: 1, kind: input, shape index: {}]   ;;  %s3181_s2 = inlined_call_operand.vmem [shape: f32[1,32], index: 2, kind: input, shape index: {}]   ;;  %s3182_s3 = inlined_call_operand.vmem [shape: f32[2,32,128], index: 3, kind: input, shape index: {}]   ;;  %s3183_s4 = inlined_call_operand.hbm [shape: f32[2,32,128], index: 4, kind: input, shape index: {}]   ;;  %s3184_s5 = inlined_call_operand.vmem [shape: f32[2,1,128], index: 5, kind: input, shape index: {}]   ;;  %s3185_s6 = inlined_call_operand.vmem [shape: f32[1,32], index: 6, kind: input, shape index: {}]   ;;  %s3186_s7 = inlined_call_operand.<no memory space> [shape: f32[1,1], index: 7, kind: input, shape index: {}]   ;;  %s3187_s8 = inlined_call_operand.vmem [shape: f32[16,1], index: 8, kind: output, shape index: {}]  }
   0x1   :  { %v13_v0 = vstv %s3186_s7 }
   0x2   :  { %14 = vst [vmem:[#allocation3] sm:$0x1] %v13_v0 }
   0x3   :  { %15 = vsyncpa [#allocation5], 0  ;;  %s2774_s29 = smov [#allocation4]   ;;  %s2750_s11 = scalar_lea.hbm %s3183_s4, 1024 }
   0x4   :  { %s29_s30 = sshll.u32 %s2774_s29, 4  ;;  %p2751_p0 = scmp.ne.s32.totalorder %s3183_s4, %s2750_s11  ;;  %s30_s30 = int_to_ptr.vmem [resolvable:$true] %s29_s30 }
   0x5   :  { %p2754_p1 = scmp.lt.u32.totalorder %s2750_s11, %s3183_s4 }
   0x7   :  { %p2756_p2 = pnand %p2754_p1, %p2751_p0 }
   0x9   :  { %2759 = shalt.err (!%p2756_p2)
}
   0xa   :  { %s2760_s7 = scalar_lea.vmem %s30_s30, 1024  ;;  %p2765_p4 = scmp.lt.s32.totalorder %s30_s30, %s30_s30 }
   0xb   :  { %p2761_p3 = scmp.ne.s32.totalorder %s30_s30, %s2760_s7  ;;  %p2766_p5 = scmp.lt.s32.totalorder %s2760_s7, %s2760_s7 }
   0xd   :  { %p2767_p6 = por %p2766_p5, %p2765_p4 }
   0xf   :  { %p2768_p7 = pnand %p2767_p6, %p2761_p3 }
  0x11   :  { %2771 = shalt.err (!%p2768_p7)
}
  0x12   :  { %s2775_s16 = smov 128   ;;  %s2776_s17 = smov 8  }
  0x13   :  { %35 = dma.hbm_to_vmem [thread:$0]  %s3183_s4, 1024, %s30_s30, [#allocation5], %s2775_s16, %s2775_s16, %s2776_s17  }
  0x14   :  { %2772 = dma.done.wait [#allocation5], 1024  }
  0x15   :  { %2773 = vsyncadd [#allocation5], 4294966272  ;;  %vm59_vm0 = vcmask 326656   ;;  %v47_v1 = vld [vmem:[%s3180_s1] sm:$0xff]  ;;  %v48_v2 = vld [vmem:[%s3180_s1 + $0x8] sm:$0xff]  ;;  %v2777_v19 = vmov 0.0|0.0  }
  0x16   :  { %v49_v3 = vld [vmem:[%s3180_s1 + $0x10] sm:$0xff]  ;;  %v2486_v4 = vpack.c.bf16 %v48_v2, %v47_v1  ;;  %v50_v5 = vld [vmem:[%s3180_s1 + $0x18] sm:$0xff]  ;;  %v45_v6 = vld [vmem:[%s3179_s0] sm:$0xff]  ;;  %vm2778_vm1 = vmmov 0   ;;  %v2779_v23 = vmov 0.0   ;;  %vm156_vm2 = vcmask 261120  }
  0x17   :  { %v2490_v7 = vpack.c.bf16 %v50_v5, %v49_v3  ;;  %2285 = vmatprep.mubr.msk.f32.mxu0 %vm59_vm0, %v45_v6  ;;  %v145_v8 = vld [vmem:[%s3182_s3] sm:$0xff]  ;;  %v146_v9 = vld [vmem:[%s3182_s3 + $0x8] sm:$0xff]  ;;  %v147_v13 = vld [vmem:[%s3182_s3 + $0x10] sm:$0xff]  ;;  %s2780_s19 = smov 64   ;;  %s2781_s20 = smov 32   ;;  %vm340_vm3 = vcmask 254976  }
  0x18   :  { %2487 = vmatprep.subr.bf16.mxu0 %v2486_v4  ;;  %v2494_v10 = vpack.c.bf16 %v146_v9, %v145_v8  ;;  %v51_v11 = vld [vmem:[%s3180_s1 + $0x20] sm:$0xff]  ;;  %v46_v12 = vld [vmem:[%s3179_s0 + $0x8] sm:$0xff]  ;;  %v148_v14 = vld [vmem:[%s3182_s3 + $0x18] sm:$0xff]  ;;  %vm449_vm4 = vcmask 257026   ;;  %vm673_vm5 = vcmask 261126   ;;  %vm561_vm6 = vcmask 259076  }
  0x19   :  { %2489 = vmatpush3.bf16.msra.mxu0 %v2486_v4  ;;  %v2498_v15 = vpack.c.bf16 %v148_v14, %v147_v13  ;;  %v141_v16 = vld [vmem:[#allocation4] sm:$0xff]  ;;  %v142_v17 = vld [vmem:[#allocation4 + $0x8] sm:$0xff]  ;;  %v143_v20 = vld [vmem:[#allocation4 + $0x10] sm:$0xff]  ;;  %vm2120_vm7 = vcmask 7168  }
  0x1a   :  { %2491 = vmatprep.subr.bf16.mxu0 %v2490_v7  ;;  %2495 = vmatprep.subr.bf16.mxu1 %v2494_v10  ;;  %v2877_v18 = vpack.c.bf16 %v142_v17, %v141_v16  ;;  %v144_v21 = vld [vmem:[#allocation4 + $0x18] sm:$0xff]  ;;  %v2128_v24 = vld [vmem:[%s3181_s2] ss:$0 sm:$0xff] }
  0x1b   :  { %2497 = vmatpush3.bf16.msra.mxu1 %v2494_v10  ;;  %v2883_v22 = vpack.c.bf16 %v144_v21, %v143_v20  ;;  %v2131_v29 = vld [vmem:[%s3184_s5] ss:$0 sm:$0xff] }
  0x1c   :  { %2499 = vmatprep.subr.bf16.mxu1 %v2498_v15 }
  0x1d   :  { %2493 = vmatpush3.bf16.msra.mxu0 %v2490_v7 }
  0x1e   :  { %2283 = vmatprep.subr.mxu0 %v51_v11 }
  0x1f   :  { %2501 = vmatpush3.bf16.msra.mxu1 %v2498_v15 }
  0x20   :  { %2502 = vmatprep.subr.bf16.mxu1 %v2777_v19 }
  0x21   :  { %2284 = vmatpush3.msra.mxu0 %v51_v11 }
  0x22   :  { %2286 = vmatmul.mubr.msk.f32.vlgmr.msra.gmra.mrb[0].mxu0 %vm59_vm0, %v46_v12  ;;  %2508 = vmatprep.subr.bf16.mxu0 %v2777_v19 }
  0x23   :  { %2510 = vmatpush3.bf16.msra.mxu0 %v2877_v18  ;;  %2318 = vmatprep.mubr.msk.f32.mxu0 %vm2778_vm1, %v2779_v23 }
  0x24   :  { %2511 = vmatprep.subr.bf16.mxu0 %v2777_v19 }
  0x27   :  { %2513 = vmatpush3.bf16.msra.mxu0 %v2883_v22 }
  0x28   :  { %2520 = vmatprep.subr.bf16.mxu0 %v2777_v19 }
  0xf5   :  { %v2287_v25 = vpop.f32.mrb[0].mxu0 }
  0xf6   :  { %v132_v26 = vpop.f32.mrb[1].mxu0  ;;  %v138_v28 = vadd.f32 %v2287_v25, %v2128_v24 }
  0xf7   :  { %v133_v27 = vadd.f32 %v2128_v24, %v132_v26 }
  0xf9   :  { %2296 = vmatprep.mubr.msk.f32.mxu1 %vm156_vm2, %v133_v27 }
  0xfa   :  { %2297 = vmatmul.mubr.msk.f32.vlgmr.msra.gmra.mrb[0].mxu1 %vm156_vm2, %v138_v28 }
  0xfb   :  { %2504 = vmatpush3.bf16.msra.mxu1 %v2877_v18  ;;  %2307 = vmatprep.mubr.msk.f32.mxu1 %vm2778_vm1, %v2779_v23 }
  0xfc   :  { %2505 = vmatprep.subr.bf16.mxu1 %v2777_v19 }
  0xff   :  { %2507 = vmatpush3.bf16.msra.mxu1 %v2883_v22 }
 0x100   :  { %2514 = vmatprep.subr.bf16.mxu1 %v2777_v19 }
 0x102   :  { %2308 = vmatmul.mubr.f32.vlgmr.msra.gmra.mrb[2].mxu1 %v2779_v23 }
 0x103   :  { %2516 = vmatpush3.bf16.msra.mxu1 %v2877_v18  ;;  %2329 = vmatprep.mubr.msk.f32.mxu1 %vm2778_vm1, %v2779_v23 }
 0x104   :  { %2517 = vmatprep.subr.bf16.mxu1 %v2777_v19 }
 0x107   :  { %2519 = vmatpush3.bf16.msra.mxu1 %v2883_v22 }
 0x108   :  { %2526 = vmatprep.subr.bf16.mxu1 %v2777_v19 }
 0x1cd   :  { %v2298_v30 = vpop.f32.mrb[0].mxu1 }
 0x1ce   :  { %v2910_v31 = vadd.f32 %v2298_v30, %v2131_v29  ;;  %v229_v32 = vpop.f32.mrb[1].mxu1 }
 0x1cf   :  { %v2912_v33 = vadd.f32 %v2131_v29, %v229_v32 }
 0x1d5   :  { %v307_v34 = vpop.f32.mrb[2].mxu1 }
 0x1d6   :  { %v311_v35 = vadd.f32 %v307_v34, %v2912_v33  ;;  %v2309_v36 = vpop.f32.mrb[3].mxu1 }
 0x1d8   :  { %2614 = vtanh.f32 %v311_v35  ;;  %v2134_v38 = vmul.f32 -1.442695, %v311_v35 }
 0x1da   :  { %2616 = vpow2.f32 %v2134_v38 }
 0x1e2   :  { %v2615_v37 = vpop.eup %2614 }
 0x1e3   :  { %321 = vrot.lane.b32.xlu0 %v2615_v37, %s2780_s19 }
 0x1e4   :  { %v2617_v39 = vpop.eup %2616 }
 0x1e5   :  { %v315_v40 = vadd.f32 1.0, %v2617_v39 }
 0x1e7   :  { %2618 = vrcp.f32 %v315_v40 }
 0x1f1   :  { %v2619_v41 = vpop.eup %2618 }
 0x1f2   :  { %v319_v44 = vmul.f32 0.0, %v2619_v41 }
 0x255   :  { %v322_v42 = vpop.permute.xlu0 %321 }
 0x256   :  { %v324_v43 = vmul.f32 %v2619_v41, %v322_v42 }
 0x258   :  { %326 = vrot.lane.b32.xlu0 %v324_v43, %s2781_s20 }
 0x2ca   :  { %v327_v45 = vpop.permute.xlu0 %326 }
 0x2cb   :  { %v329_v46 = vadd.f32 %v327_v45, %v319_v44 }
 0x2cd   :  { %2620 = vtanh.f32 %v329_v46  ;;  %v426_v62 = vrot.slane %v329_v46, 6 }
 0x2d7   :  { %v2621_v47 = vpop.eup %2620 }
 0x2d8   :  { %332 = vrot.lane.b32.xlu1 %v2621_v47, %s2780_s19 }
 0x34a   :  { %v333_v48 = vpop.permute.xlu1 %332 }
 0x34b   :  { %v335_v49 = vmul.f32 %v2619_v41, %v333_v48 }
 0x34d   :  { %337 = vrot.lane.b32.xlu1 %v335_v49, %s2781_s20 }
 0x3bf   :  { %v338_v50 = vpop.permute.xlu1 %337 }
 0x3c0   :  { %341 = vst.msk [vmem:[#allocation2] sm:$0x3] %vm340_vm3, %v338_v50  ;;  %2319 = vmatmul.mubr.msk.f32.vlgmr.msra.gmra.mrb[2].mxu0 %vm156_vm2, %v338_v50 }
 0x3c1   :  { %2522 = vmatpush3.bf16.msra.mxu0 %v2877_v18  ;;  %2340 = vmatprep.mubr.msk.f32.mxu0 %vm2778_vm1, %v2779_v23 }
 0x3c2   :  { %2523 = vmatprep.subr.bf16.mxu0 %v2777_v19 }
 0x3c5   :  { %2525 = vmatpush3.bf16.msra.mxu0 %v2883_v22 }
 0x3c6   :  { %2532 = vmatprep.subr.bf16.mxu0 %v2777_v19 }
 0x493   :  { %v410_v51 = vpop.f32.mrb[2].mxu0 }
 0x494   :  { %v415_v52 = vrot.slane %v410_v51, 6  ;;  %v2320_v53 = vpop.f32.mrb[3].mxu0 }
 0x496   :  { %v417_v54 = vadd.f32 %v415_v52, %v2912_v33 }
 0x498   :  { %2622 = vtanh.f32 %v417_v54  ;;  %v2136_v56 = vmul.f32 -1.442695, %v417_v54 }
 0x49a   :  { %2624 = vpow2.f32 %v2136_v56 }
 0x4a2   :  { %v2623_v55 = vpop.eup %2622 }
 0x4a3   :  { %430 = vrot.lane.b32.xlu0 %v2623_v55, %s2780_s19 }
 0x4a4   :  { %v2625_v57 = vpop.eup %2624 }
 0x4a5   :  { %v421_v58 = vadd.f32 1.0, %v2625_v57 }
 0x4a7   :  { %2626 = vrcp.f32 %v421_v58 }
 0x4b1   :  { %v2627_v59 = vpop.eup %2626 }
 0x4b2   :  { %v428_v63 = vmul.f32 %v2627_v59, %v426_v62 }
 0x515   :  { %v431_v60 = vpop.permute.xlu0 %430 }
 0x516   :  { %v433_v61 = vmul.f32 %v2627_v59, %v431_v60 }
 0x518   :  { %435 = vrot.lane.b32.xlu1 %v433_v61, %s2781_s20 }
 0x58a   :  { %v436_v0 = vpop.permute.xlu1 %435 }
 0x58b   :  { %v438_v1 = vadd.f32 %v436_v0, %v428_v63 }
 0x58d   :  { %2628 = vtanh.f32 %v438_v1  ;;  %v538_v20 = vrot.slane %v438_v1, 6 }
 0x597   :  { %v2629_v2 = vpop.eup %2628 }
 0x598   :  { %441 = vrot.lane.b32.xlu0 %v2629_v2, %s2780_s19 }
 0x60a   :  { %v442_v3 = vpop.permute.xlu0 %441 }
 0x60b   :  { %v2931_v4 = vmul.f32 %v2627_v59, %v442_v3 }
 0x60d   :  { %v451_v5 = vrot.slane %v2931_v4, 2 }
 0x60f   :  { %452 = vrot.lane.b32.xlu1 %v451_v5, %s2781_s20 }
 0x681   :  { %v453_v6 = vpop.permute.xlu1 %452 }
 0x682   :  { %2330 = vmatmul.mubr.msk.f32.vlgmr.msra.gmra.mrb[4].mxu1 %vm156_vm2, %v453_v6 }
 0x683   :  { %2528 = vmatpush3.bf16.msra.mxu1 %v2877_v18  ;;  %2351 = vmatprep.mubr.msk.f32.mxu1 %vm2778_vm1, %v2779_v23 }
 0x684   :  { %2529 = vmatprep.subr.bf16.mxu1 %v2777_v19 }
 0x687   :  { %2531 = vmatpush3.bf16.msra.mxu1 %v2883_v22 }
 0x688   :  { %2538 = vmatprep.subr.bf16.mxu1 %v2777_v19 }
 0x755   :  { %v522_v7 = vpop.f32.mrb[4].mxu1 }
 0x756   :  { %v527_v8 = vrot.slane %v522_v7, 4  ;;  %v2331_v9 = vpop.f32.mrb[5].mxu1 }
 0x758   :  { %v529_v10 = vadd.f32 %v527_v8, %v2912_v33 }
 0x75a   :  { %2630 = vtanh.f32 %v529_v10  ;;  %v2138_v12 = vmul.f32 -1.442695, %v529_v10 }
 0x75c   :  { %2632 = vpow2.f32 %v2138_v12 }
 0x764   :  { %v2631_v11 = vpop.eup %2630 }
 0x765   :  { %542 = vrot.lane.b32.xlu0 %v2631_v11, %s2780_s19 }
 0x766   :  { %v2633_v13 = vpop.eup %2632 }
 0x767   :  { %v533_v14 = vadd.f32 1.0, %v2633_v13 }
 0x769   :  { %2634 = vrcp.f32 %v533_v14 }
 0x773   :  { %v2635_v15 = vpop.eup %2634 }
 0x774   :  { %v540_v21 = vmul.f32 %v2635_v15, %v538_v20 }
 0x7d7   :  { %v543_v16 = vpop.permute.xlu0 %542 }
 0x7d8   :  { %v545_v17 = vmul.f32 %v2635_v15, %v543_v16 }
 0x7da   :  { %547 = vrot.lane.b32.xlu1 %v545_v17, %s2781_s20 }
 0x84c   :  { %v548_v24 = vpop.permute.xlu1 %547 }
 0x84d   :  { %v550_v25 = vadd.f32 %v548_v24, %v540_v21 }
 0x84f   :  { %2636 = vtanh.f32 %v550_v25  ;;  %v650_v44 = vrot.slane %v550_v25, 6 }
 0x859   :  { %v2637_v26 = vpop.eup %2636 }
 0x85a   :  { %553 = vrot.lane.b32.xlu0 %v2637_v26, %s2780_s19 }
 0x8cc   :  { %v554_v27 = vpop.permute.xlu0 %553 }
 0x8cd   :  { %v2946_v28 = vmul.f32 %v2635_v15, %v554_v27 }
 0x8cf   :  { %v563_v29 = vrot.slane %v2946_v28, 4 }
 0x8d1   :  { %564 = vrot.lane.b32.xlu1 %v563_v29, %s2781_s20 }
 0x943   :  { %v565_v30 = vpop.permute.xlu1 %564 }
 0x944   :  { %2341 = vmatmul.mubr.msk.f32.vlgmr.msra.gmra.mrb[4].mxu0 %vm156_vm2, %v565_v30 }
 0x945   :  { %2534 = vmatpush3.bf16.msra.mxu0 %v2877_v18  ;;  %2362 = vmatprep.mubr.msk.f32.mxu0 %vm2778_vm1, %v2779_v23 }
 0x946   :  { %2535 = vmatprep.subr.bf16.mxu0 %v2777_v19 }
 0x949   :  { %2537 = vmatpush3.bf16.msra.mxu0 %v2883_v22 }
 0x94a   :  { %2544 = vmatprep.subr.bf16.mxu0 %v2777_v19 }
 0xa17   :  { %v634_v32 = vpop.f32.mrb[4].mxu0 }
 0xa18   :  { %v639_v34 = vrot.slane %v634_v32, 2  ;;  %v2342_v35 = vpop.f32.mrb[5].mxu0 }
 0xa1a   :  { %v641_v36 = vadd.f32 %v639_v34, %v2912_v33 }
 0xa1c   :  { %2638 = vtanh.f32 %v641_v36  ;;  %v2140_v38 = vmul.f32 -1.442695, %v641_v36 }
 0xa1e   :  { %2640 = vpow2.f32 %v2140_v38 }
 0xa26   :  { %v2639_v37 = vpop.eup %2638 }
 0xa27   :  { %654 = vrot.lane.b32.xlu0 %v2639_v37, %s2780_s19 }
 0xa28   :  { %v2641_v39 = vpop.eup %2640 }
 0xa29   :  { %v645_v40 = vadd.f32 1.0, %v2641_v39 }
 0xa2b   :  { %2642 = vrcp.f32 %v645_v40 }
 0xa35   :  { %v2643_v41 = vpop.eup %2642 }
 0xa36   :  { %v652_v45 = vmul.f32 %v2643_v41, %v650_v44 }
 0xa99   :  { %v655_v42 = vpop.permute.xlu0 %654 }
 0xa9a   :  { %v657_v43 = vmul.f32 %v2643_v41, %v655_v42 }
 0xa9c   :  { %659 = vrot.lane.b32.xlu1 %v657_v43, %s2781_s20 }
 0xb0e   :  { %v660_v46 = vpop.permute.xlu1 %659 }
 0xb0f   :  { %v662_v47 = vadd.f32 %v660_v46, %v652_v45 }
 0xb11   :  { %2644 = vtanh.f32 %v662_v47  ;;  %v759_v62 = vrot.slane %v662_v47, 6 }
 0xb1b   :  { %v2645_v33 = vpop.eup %2644 }
 0xb1c   :  { %665 = vrot.lane.b32.xlu0 %v2645_v33, %s2780_s19 }
 0xb8e   :  { %v666_v48 = vpop.permute.xlu0 %665 }
 0xb8f   :  { %v2961_v49 = vmul.f32 %v2643_v41, %v666_v48 }
 0xb91   :  { %v675_v50 = vrot.slane %v2961_v49, 6 }
 0xb93   :  { %676 = vrot.lane.b32.xlu1 %v675_v50, %s2781_s20 }
 0xc05   :  { %v677_v51 = vpop.permute.xlu1 %676 }
 0xc06   :  { %2352 = vmatmul.mubr.msk.f32.vlgmr.msra.gmra.mrb[6].mxu1 %vm156_vm2, %v677_v51 }
 0xc07   :  { %2540 = vmatpush3.bf16.msra.mxu1 %v2877_v18  ;;  %2373 = vmatprep.mubr.msk.f32.mxu1 %vm2778_vm1, %v2779_v23 }
 0xc08   :  { %2541 = vmatprep.subr.bf16.mxu1 %v2777_v19 }
 0xc0b   :  { %2543 = vmatpush3.bf16.msra.mxu1 %v2883_v22 }
 0xcd9   :  { %v746_v52 = vpop.f32.mrb[6].mxu1 }
 0xcda   :  { %v750_v53 = vadd.f32 %v746_v52, %v2910_v31  ;;  %v2353_v54 = vpop.f32.mrb[7].mxu1 }
 0xcdc   :  { %2646 = vtanh.f32 %v750_v53  ;;  %v2142_v56 = vmul.f32 -1.442695, %v750_v53 }
 0xcde   :  { %2648 = vpow2.f32 %v2142_v56 }
 0xce6   :  { %v2647_v55 = vpop.eup %2646 }
 0xce7   :  { %763 = vrot.lane.b32.xlu0 %v2647_v55, %s2780_s19 }
 0xce8   :  { %v2649_v57 = vpop.eup %2648 }
 0xce9   :  { %v754_v58 = vadd.f32 1.0, %v2649_v57 }
 0xceb   :  { %2650 = vrcp.f32 %v754_v58 }
 0xcf5   :  { %v2651_v59 = vpop.eup %2650 }
 0xcf6   :  { %v761_v63 = vmul.f32 %v2651_v59, %v759_v62 }
 0xd59   :  { %v764_v60 = vpop.permute.xlu0 %763 }
 0xd5a   :  { %v766_v61 = vmul.f32 %v2651_v59, %v764_v60 }
 0xd5c   :  { %768 = vrot.lane.b32.xlu1 %v766_v61, %s2781_s20 }
 0xdce   :  { %v769_v0 = vpop.permute.xlu1 %768 }
 0xdcf   :  { %v771_v1 = vadd.f32 %v769_v0, %v761_v63 }
 0xdd1   :  { %2652 = vtanh.f32 %v771_v1 }
 0xddb   :  { %v2653_v2 = vpop.eup %2652 }
 0xddc   :  { %774 = vrot.lane.b32.xlu0 %v2653_v2, %s2780_s19 }
 0xe4e   :  { %v775_v3 = vpop.permute.xlu0 %774 }
 0xe4f   :  { %v777_v5 = vmul.f32 %v2651_v59, %v775_v3 }
 0xe51   :  { %779 = vrot.lane.b32.xlu1 %v777_v5, %s2781_s20 }
 0xec3   :  { %v780_v6 = vpop.permute.xlu1 %779 }
 0xec4   :  { %782 = vst.msk [vmem:[#allocation2 + $0x8] sm:$0x3] %vm340_vm3, %v780_v6  ;;  %2363 = vmatmul.mubr.msk.f32.vlgmr.msra.gmra.mrb[6].mxu0 %vm156_vm2, %v780_v6  ;;  %v2150_v6 = vld [vmem:[%s3182_s3 + $0x28] sm:$0xff] }
 0xec5   :  { %2546 = vmatpush3.bf16.msra.mxu0 %v2877_v18  ;;  %2384 = vmatprep.mubr.msk.f32.mxu0 %vm2778_vm1, %v2779_v23 }
 0xec6   :  { %2547 = vmatprep.subr.bf16.mxu0 %v2777_v19 }
 0xec9   :  { %2549 = vmatpush3.bf16.msra.mxu0 %v2883_v22  ;;  %v867_v22 = vrot.slane %v771_v1, 6 }
 0xeca   :  { %2558 = vmatprep.subr.bf16.mxu0 %v2777_v19 }
 0xf97   :  { %v851_v7 = vpop.f32.mrb[6].mxu0 }
 0xf98   :  { %v856_v8 = vrot.slane %v851_v7, 6  ;;  %v2364_v9 = vpop.f32.mrb[7].mxu0 }
 0xf99   :  { %v1117_v9 = vld [vmem:[#allocation4 + $0x28] sm:$0xff] }
 0xf9a   :  { %v858_v10 = vadd.f32 %v856_v8, %v2910_v31  ;;  %v1116_v8 = vld [vmem:[#allocation4 + $0x20] sm:$0xff] }
 0xf9c   :  { %2654 = vtanh.f32 %v858_v10  ;;  %v2144_v12 = vmul.f32 -1.442695, %v858_v10  ;;  %v2151_v10 = vld [vmem:[%s3182_s3 + $0x30] sm:$0xff] }
 0xf9e   :  { %2656 = vpow2.f32 %v2144_v12  ;;  %v1118_v12 = vld [vmem:[#allocation4 + $0x30] sm:$0xff] }
 0xfa6   :  { %v2655_v11 = vpop.eup %2654 }
 0xfa7   :  { %871 = vrot.lane.b32.xlu0 %v2655_v11, %s2780_s19  ;;  %v2152_v11 = vld [vmem:[%s3182_s3 + $0x38] sm:$0xff] }
 0xfa8   :  { %v2657_v18 = vpop.eup %2656 }
 0xfa9   :  { %v862_v13 = vadd.f32 1.0, %v2657_v18  ;;  %v1119_v18 = vld [vmem:[#allocation4 + $0x38] sm:$0xff] }
 0xfab   :  { %2658 = vrcp.f32 %v862_v13  ;;  %v2554_v13 = vpack.c.bf16 %v2152_v11, %v2151_v10 }
 0xfb5   :  { %v2659_v14 = vpop.eup %2658 }
 0xfb6   :  { %v869_v17 = vmul.f32 %v2659_v14, %v867_v22 }
0x1019   :  { %v872_v15 = vpop.permute.xlu0 %871 }
0x101a   :  { %v874_v16 = vmul.f32 %v2659_v14, %v872_v15 }
0x101c   :  { %876 = vrot.lane.b32.xlu1 %v874_v16, %s2781_s20 }
0x108e   :  { %v877_v20 = vpop.permute.xlu1 %876 }
0x108f   :  { %v879_v21 = vadd.f32 %v877_v20, %v869_v17 }
0x1091   :  { %2660 = vtanh.f32 %v879_v21  ;;  %v978_v43 = vrot.slane %v879_v21, 6 }
0x109b   :  { %v2661_v24 = vpop.eup %2660 }
0x109c   :  { %882 = vrot.lane.b32.xlu0 %v2661_v24, %s2780_s19 }
0x110e   :  { %v883_v25 = vpop.permute.xlu0 %882 }
0x110f   :  { %v2988_v26 = vmul.f32 %v2659_v14, %v883_v25  ;;  %v3032_v14 = vpack.c.bf16 %v1119_v18, %v1118_v12 }
0x1111   :  { %v891_v27 = vrot.slane %v2988_v26, 2 }
0x1113   :  { %892 = vrot.lane.b32.xlu1 %v891_v27, %s2781_s20  ;;  %v2154_v27 = vld [vmem:[%s3184_s5 + $0x1] ss:$0 sm:$0xff] }
0x1185   :  { %v893_v29 = vpop.permute.xlu1 %892 }
0x1186   :  { %2374 = vmatmul.mubr.msk.f32.vlgmr.msra.gmra.mrb[8].mxu1 %vm156_vm2, %v893_v29 }
0x1259   :  { %v962_v30 = vpop.f32.mrb[8].mxu1 }
0x125a   :  { %v967_v32 = vrot.slane %v962_v30, 4  ;;  %v2375_v34 = vpop.f32.mrb[9].mxu1 }
0x125c   :  { %v969_v35 = vadd.f32 %v967_v32, %v2910_v31 }
0x125e   :  { %2662 = vtanh.f32 %v969_v35  ;;  %v2146_v37 = vmul.f32 -1.442695, %v969_v35 }
0x1260   :  { %2664 = vpow2.f32 %v2146_v37 }
0x1268   :  { %v2663_v36 = vpop.eup %2662 }
0x1269   :  { %982 = vrot.lane.b32.xlu0 %v2663_v36, %s2780_s19 }
0x126a   :  { %v2665_v38 = vpop.eup %2664 }
0x126b   :  { %v973_v39 = vadd.f32 1.0, %v2665_v38 }
0x126d   :  { %2666 = vrcp.f32 %v973_v39 }
0x1277   :  { %v2667_v40 = vpop.eup %2666 }
0x1278   :  { %v980_v44 = vmul.f32 %v2667_v40, %v978_v43 }
0x12db   :  { %v983_v41 = vpop.permute.xlu0 %982 }
0x12dc   :  { %v985_v42 = vmul.f32 %v2667_v40, %v983_v41 }
0x12de   :  { %987 = vrot.lane.b32.xlu1 %v985_v42, %s2781_s20 }
0x1350   :  { %v988_v45 = vpop.permute.xlu1 %987 }
0x1351   :  { %v990_v46 = vadd.f32 %v988_v45, %v980_v44 }
0x1353   :  { %2668 = vtanh.f32 %v990_v46 }
0x135d   :  { %v2669_v47 = vpop.eup %2668 }
0x135e   :  { %993 = vrot.lane.b32.xlu0 %v2669_v47, %s2780_s19 }
0x13d0   :  { %v994_v33 = vpop.permute.xlu0 %993 }
0x13d1   :  { %v996_v48 = vmul.f32 %v2667_v40, %v994_v33 }
0x13d3   :  { %v1002_v50 = vrot.slane %v996_v48, 4 }
0x13d5   :  { %1003 = vrot.lane.b32.xlu1 %v1002_v50, %s2781_s20 }
0x1447   :  { %v1004_v51 = vpop.permute.xlu1 %1003 }
0x1448   :  { %2385 = vmatmul.mubr.msk.f32.vlgmr.msra.gmra.mrb[8].mxu0 %vm156_vm2, %v1004_v51 }
0x1449   :  { %2406 = vmatprep.mubr.msk.f32.mxu0 %vm2778_vm1, %v2779_v23 }
0x151b   :  { %v1073_v52 = vpop.f32.mrb[8].mxu0 }
0x151c   :  { %v1078_v53 = vrot.slane %v1073_v52, 2  ;;  %v2386_v54 = vpop.f32.mrb[9].mxu0 }
0x151e   :  { %v1080_v55 = vadd.f32 %v1078_v53, %v2910_v31  ;;  %v1089_v31 = vrot.slane %v990_v46, 6 }
0x1520   :  { %2670 = vtanh.f32 %v1080_v55  ;;  %v2148_v57 = vmul.f32 -1.442695, %v1080_v55 }
0x1522   :  { %2672 = vpow2.f32 %v2148_v57 }
0x152a   :  { %v2671_v56 = vpop.eup %2670 }
0x152b   :  { %1093 = vrot.lane.b32.xlu0 %v2671_v56, %s2780_s19 }
0x152c   :  { %v2673_v58 = vpop.eup %2672 }
0x152d   :  { %v1084_v59 = vadd.f32 1.0, %v2673_v58 }
0x152f   :  { %2674 = vrcp.f32 %v1084_v59 }
0x1539   :  { %v2675_v60 = vpop.eup %2674 }
0x153a   :  { %v1091_v63 = vmul.f32 %v2675_v60, %v1089_v31 }
0x159d   :  { %v1094_v61 = vpop.permute.xlu0 %1093 }
0x159e   :  { %v1096_v62 = vmul.f32 %v2675_v60, %v1094_v61 }
0x15a0   :  { %1098 = vrot.lane.b32.xlu1 %v1096_v62, %s2781_s20 }
0x15a4   :  { %446 = vrot.lane.b32.xlu1 %v2931_v4, %s2781_s20 }
0x15a8   :  { %670 = vrot.lane.b32.xlu1 %v2961_v49, %s2781_s20  ;;  %v2149_v49 = vld [vmem:[%s3182_s3 + $0x20] sm:$0xff] }
0x15a9   :  { %v2550_v7 = vpack.c.bf16 %v2150_v6, %v2149_v49 }
0x15ab   :  { %2551 = vmatprep.subr.bf16.mxu1 %v2550_v7 }
0x15ac   :  { %998 = vrot.lane.b32.xlu1 %v996_v48, %s2781_s20  ;;  %2553 = vmatpush3.bf16.msra.mxu1 %v2550_v7 }
0x15ad   :  { %2555 = vmatprep.subr.bf16.mxu1 %v2554_v13 }
0x15b0   :  { %2557 = vmatpush3.bf16.msra.mxu1 %v2554_v13 }
0x15b1   :  { %2564 = vmatprep.subr.bf16.mxu1 %v2777_v19 }
0x1612   :  { %v1099_v0 = vpop.permute.xlu1 %1098 }
0x1613   :  { %v1101_v1 = vadd.f32 %v1099_v0, %v1091_v63 }
0x1615   :  { %2676 = vtanh.f32 %v1101_v1 }
0x1616   :  { %v447_v2 = vpop.permute.xlu1 %446 }
0x1617   :  { %450 = vst.msk [vmem:[#allocation2] sm:$0xc] %vm449_vm4, %v447_v2 }
0x161a   :  { %v671_v3 = vpop.permute.xlu1 %670 }
0x161b   :  { %674 = vst.msk [vmem:[#allocation2] sm:$0xc0] %vm673_vm5, %v671_v3 }
0x161e   :  { %v999_v4 = vpop.permute.xlu1 %998 }
0x161f   :  { %v2677_v5 = vpop.eup %2676  ;;  %1001 = vst.msk [vmem:[#allocation2 + $0x8] sm:$0x30] %vm561_vm6, %v999_v4 }
0x1620   :  { %1104 = vrot.lane.b32.xlu0 %v2677_v5, %s2780_s19 }
0x1624   :  { %558 = vrot.lane.b32.xlu0 %v2946_v28, %s2781_s20  ;;  %v3026_v28 = vpack.c.bf16 %v1117_v9, %v1116_v8 }
0x1626   :  { %2560 = vmatpush3.bf16.msra.mxu0 %v3026_v28 }
0x1627   :  { %2561 = vmatprep.subr.bf16.mxu0 %v2777_v19 }
0x1628   :  { %887 = vrot.lane.b32.xlu0 %v2988_v26, %s2781_s20 }
0x162a   :  { %2563 = vmatpush3.bf16.msra.mxu0 %v3032_v14 }
0x162b   :  { %2570 = vmatprep.subr.bf16.mxu0 %v2777_v19 }
0x162d   :  { %2407 = vmatmul.mubr.f32.vlgmr.msra.gmra.mrb[10].mxu0 %v2779_v23 }
0x162e   :  { %2572 = vmatpush3.bf16.msra.mxu0 %v3026_v28  ;;  %2428 = vmatprep.mubr.msk.f32.mxu0 %vm2778_vm1, %v2779_v23 }
0x162f   :  { %2573 = vmatprep.subr.bf16.mxu0 %v2777_v19 }
0x1632   :  { %2575 = vmatpush3.bf16.msra.mxu0 %v3032_v14 }
0x1633   :  { %2582 = vmatprep.subr.bf16.mxu0 %v2777_v19 }
0x1692   :  { %v1105_v15 = vpop.permute.xlu0 %1104 }
0x1693   :  { %v1107_v16 = vmul.f32 %v2675_v60, %v1105_v15 }
0x1695   :  { %1109 = vrot.lane.b32.xlu0 %v1107_v16, %s2781_s20 }
0x1696   :  { %v559_v22 = vpop.permute.xlu0 %558 }
0x1697   :  { %562 = vst.msk [vmem:[#allocation2] sm:$0x30] %vm561_vm6, %v559_v22 }
0x169a   :  { %v888_v17 = vpop.permute.xlu0 %887 }
0x169b   :  { %890 = vst.msk [vmem:[#allocation2 + $0x8] sm:$0xc] %vm449_vm4, %v888_v17 }
0x169e   :  { %v1113_v20 = vld [vmem:[#allocation2] sm:$0xff] }
0x169f   :  { %2395 = vmatprep.mubr.msk.f32.mxu1 %vm156_vm2, %v1113_v20 }
0x1700   :  { %v1280_v25 = vpop.f32.mrb[10].mxu0 }
0x1701   :  { %v2408_v26 = vpop.f32.mrb[11].mxu0 }
0x1707   :  { %v1110_v21 = vpop.permute.xlu0 %1109 }
0x1708   :  { %1112 = vst.msk [vmem:[#allocation2 + $0x8] sm:$0xc0] %vm673_vm5, %v1110_v21 }
0x170f   :  { %v1114_v24 = vld [vmem:[#allocation2 + $0x8] sm:$0xff] }
0x1710   :  { %2396 = vmatmul.mubr.msk.f32.vlgmr.msra.gmra.mrb[10].mxu1 %vm156_vm2, %v1114_v24 }
0x1711   :  { %2566 = vmatpush3.bf16.msra.mxu1 %v3026_v28  ;;  %2417 = vmatprep.mubr.msk.f32.mxu1 %vm2778_vm1, %v2779_v23 }
0x1712   :  { %2567 = vmatprep.subr.bf16.mxu1 %v2777_v19 }
0x1715   :  { %2569 = vmatpush3.bf16.msra.mxu1 %v3032_v14 }
0x1716   :  { %2576 = vmatprep.subr.bf16.mxu1 %v2777_v19 }
0x17e3   :  { %v2397_v29 = vpop.f32.mrb[10].mxu1 }
0x17e4   :  { %v3060_v30 = vadd.f32 %v2397_v29, %v2154_v27  ;;  %v1205_v32 = vpop.f32.mrb[11].mxu1 }
0x17e5   :  { %v3062_v34 = vadd.f32 %v2154_v27, %v1205_v32 }
0x17e7   :  { %v1284_v35 = vadd.f32 %v1280_v25, %v3062_v34 }
0x17e9   :  { %2678 = vtanh.f32 %v1284_v35  ;;  %v2157_v37 = vmul.f32 -1.442695, %v1284_v35 }
0x17eb   :  { %2680 = vpow2.f32 %v2157_v37 }
0x17f3   :  { %v2679_v36 = vpop.eup %2678 }
0x17f4   :  { %1294 = vrot.lane.b32.xlu1 %v2679_v36, %s2780_s19 }
0x17f5   :  { %v2681_v38 = vpop.eup %2680 }
0x17f6   :  { %v1288_v39 = vadd.f32 1.0, %v2681_v38 }
0x17f8   :  { %2682 = vrcp.f32 %v1288_v39 }
0x1802   :  { %v2683_v40 = vpop.eup %2682 }
0x1803   :  { %v1292_v43 = vmul.f32 0.0, %v2683_v40 }
0x1866   :  { %v1295_v41 = vpop.permute.xlu1 %1294 }
0x1867   :  { %v1297_v42 = vmul.f32 %v2683_v40, %v1295_v41 }
0x1869   :  { %1299 = vrot.lane.b32.xlu0 %v1297_v42, %s2781_s20 }
0x18db   :  { %v1300_v44 = vpop.permute.xlu0 %1299 }
0x18dc   :  { %v1302_v45 = vadd.f32 %v1300_v44, %v1292_v43 }
0x18de   :  { %2684 = vtanh.f32 %v1302_v45  ;;  %v1398_v61 = vrot.slane %v1302_v45, 6 }
0x18e8   :  { %v2685_v46 = vpop.eup %2684 }
0x18e9   :  { %1305 = vrot.lane.b32.xlu1 %v2685_v46, %s2780_s19 }
0x195b   :  { %v1306_v47 = vpop.permute.xlu1 %1305 }
0x195c   :  { %v1308_v33 = vmul.f32 %v2683_v40, %v1306_v47 }
0x195e   :  { %1310 = vrot.lane.b32.xlu0 %v1308_v33, %s2781_s20 }
0x19d0   :  { %v1311_v48 = vpop.permute.xlu0 %1310 }
0x19d1   :  { %1313 = vst.msk [vmem:[#allocation2] sm:$0x3] %vm340_vm3, %v1311_v48  ;;  %2418 = vmatmul.mubr.msk.f32.vlgmr.msra.gmra.mrb[12].mxu1 %vm156_vm2, %v1311_v48 }
0x19d2   :  { %2578 = vmatpush3.bf16.msra.mxu1 %v3026_v28  ;;  %2439 = vmatprep.mubr.msk.f32.mxu1 %vm2778_vm1, %v2779_v23 }
0x19d3   :  { %2579 = vmatprep.subr.bf16.mxu1 %v2777_v19 }
0x19d6   :  { %2581 = vmatpush3.bf16.msra.mxu1 %v3032_v14 }
0x19d7   :  { %2588 = vmatprep.subr.bf16.mxu1 %v2777_v19 }
0x1aa4   :  { %v1382_v50 = vpop.f32.mrb[12].mxu1 }
0x1aa5   :  { %v1387_v51 = vrot.slane %v1382_v50, 6  ;;  %v2419_v52 = vpop.f32.mrb[13].mxu1 }
0x1aa7   :  { %v1389_v53 = vadd.f32 %v1387_v51, %v3062_v34 }
0x1aa9   :  { %2686 = vtanh.f32 %v1389_v53  ;;  %v2159_v55 = vmul.f32 -1.442695, %v1389_v53 }
0x1aab   :  { %2688 = vpow2.f32 %v2159_v55 }
0x1ab3   :  { %v2687_v54 = vpop.eup %2686 }
0x1ab4   :  { %1402 = vrot.lane.b32.xlu1 %v2687_v54, %s2780_s19 }
0x1ab5   :  { %v2689_v56 = vpop.eup %2688 }
0x1ab6   :  { %v1393_v57 = vadd.f32 1.0, %v2689_v56 }
0x1ab8   :  { %2690 = vrcp.f32 %v1393_v57 }
0x1ac2   :  { %v2691_v58 = vpop.eup %2690 }
0x1ac3   :  { %v1400_v62 = vmul.f32 %v2691_v58, %v1398_v61 }
0x1b26   :  { %v1403_v59 = vpop.permute.xlu1 %1402 }
0x1b27   :  { %v1405_v60 = vmul.f32 %v2691_v58, %v1403_v59 }
0x1b29   :  { %1407 = vrot.lane.b32.xlu0 %v1405_v60, %s2781_s20 }
0x1b9b   :  { %v1408_v31 = vpop.permute.xlu0 %1407 }
0x1b9c   :  { %v1410_v63 = vadd.f32 %v1408_v31, %v1400_v62 }
0x1b9e   :  { %2692 = vtanh.f32 %v1410_v63  ;;  %v1509_v15 = vrot.slane %v1410_v63, 6 }
0x1ba8   :  { %v2693_v0 = vpop.eup %2692 }
0x1ba9   :  { %1413 = vrot.lane.b32.xlu1 %v2693_v0, %s2780_s19 }
0x1c1b   :  { %v1414_v1 = vpop.permute.xlu1 %1413 }
0x1c1c   :  { %v3081_v2 = vmul.f32 %v2691_v58, %v1414_v1 }
0x1c1e   :  { %v1422_v3 = vrot.slane %v3081_v2, 2 }
0x1c20   :  { %1423 = vrot.lane.b32.xlu0 %v1422_v3, %s2781_s20 }
0x1c92   :  { %v1424_v4 = vpop.permute.xlu0 %1423 }
0x1c93   :  { %2429 = vmatmul.mubr.msk.f32.vlgmr.msra.gmra.mrb[12].mxu0 %vm156_vm2, %v1424_v4 }
0x1c94   :  { %2584 = vmatpush3.bf16.msra.mxu0 %v3026_v28  ;;  %2450 = vmatprep.mubr.msk.f32.mxu0 %vm2778_vm1, %v2779_v23 }
0x1c95   :  { %2585 = vmatprep.subr.bf16.mxu0 %v2777_v19 }
0x1c98   :  { %2587 = vmatpush3.bf16.msra.mxu0 %v3032_v14 }
0x1c99   :  { %2594 = vmatprep.subr.bf16.mxu0 %v2777_v19 }
0x1d66   :  { %v1493_v5 = vpop.f32.mrb[12].mxu0 }
0x1d67   :  { %v1498_v49 = vrot.slane %v1493_v5, 4  ;;  %v2430_v6 = vpop.f32.mrb[13].mxu0 }
0x1d69   :  { %v1500_v7 = vadd.f32 %v1498_v49, %v3062_v34 }
0x1d6b   :  { %2694 = vtanh.f32 %v1500_v7  ;;  %v2161_v9 = vmul.f32 -1.442695, %v1500_v7 }
0x1d6d   :  { %2696 = vpow2.f32 %v2161_v9 }
0x1d75   :  { %v2695_v8 = vpop.eup %2694 }
0x1d76   :  { %1513 = vrot.lane.b32.xlu1 %v2695_v8, %s2780_s19 }
0x1d77   :  { %v2697_v10 = vpop.eup %2696 }
0x1d78   :  { %v1504_v11 = vadd.f32 1.0, %v2697_v10 }
0x1d7a   :  { %2698 = vrcp.f32 %v1504_v11 }
0x1d84   :  { %v2699_v12 = vpop.eup %2698 }
0x1d85   :  { %v1511_v16 = vmul.f32 %v2699_v12, %v1509_v15 }
0x1de8   :  { %v1514_v18 = vpop.permute.xlu1 %1513 }
0x1de9   :  { %v1516_v13 = vmul.f32 %v2699_v12, %v1514_v18 }
0x1deb   :  { %1518 = vrot.lane.b32.xlu0 %v1516_v13, %s2781_s20 }
0x1e5d   :  { %v1519_v22 = vpop.permute.xlu0 %1518 }
0x1e5e   :  { %v1521_v17 = vadd.f32 %v1519_v22, %v1511_v16 }
0x1e60   :  { %2700 = vtanh.f32 %v1521_v17  ;;  %v1620_v43 = vrot.slane %v1521_v17, 6 }
0x1e6a   :  { %v2701_v20 = vpop.eup %2700 }
0x1e6b   :  { %1524 = vrot.lane.b32.xlu1 %v2701_v20, %s2780_s19 }
0x1edd   :  { %v1525_v21 = vpop.permute.xlu1 %1524 }
0x1ede   :  { %v3096_v24 = vmul.f32 %v2699_v12, %v1525_v21 }
0x1ee0   :  { %v1533_v25 = vrot.slane %v3096_v24, 4 }
0x1ee2   :  { %1534 = vrot.lane.b32.xlu0 %v1533_v25, %s2781_s20 }
0x1f54   :  { %v1535_v26 = vpop.permute.xlu0 %1534 }
0x1f55   :  { %2440 = vmatmul.mubr.msk.f32.vlgmr.msra.gmra.mrb[14].mxu1 %vm156_vm2, %v1535_v26 }
0x1f56   :  { %2590 = vmatpush3.bf16.msra.mxu1 %v3026_v28  ;;  %2461 = vmatprep.mubr.msk.f32.mxu1 %vm2778_vm1, %v2779_v23 }
0x1f57   :  { %2591 = vmatprep.subr.bf16.mxu1 %v2777_v19 }
0x1f5a   :  { %2593 = vmatpush3.bf16.msra.mxu1 %v3032_v14 }
0x1f5b   :  { %2600 = vmatprep.subr.bf16.mxu1 %v2777_v19 }
0x2028   :  { %v1604_v27 = vpop.f32.mrb[14].mxu1 }
0x2029   :  { %v1609_v29 = vrot.slane %v1604_v27, 2  ;;  %v2441_v32 = vpop.f32.mrb[15].mxu1 }
0x202b   :  { %v1611_v35 = vadd.f32 %v1609_v29, %v3062_v34 }
0x202d   :  { %2702 = vtanh.f32 %v1611_v35  ;;  %v2163_v37 = vmul.f32 -1.442695, %v1611_v35 }
0x202f   :  { %2704 = vpow2.f32 %v2163_v37 }
0x2037   :  { %v2703_v36 = vpop.eup %2702 }
0x2038   :  { %1624 = vrot.lane.b32.xlu1 %v2703_v36, %s2780_s19 }
0x2039   :  { %v2705_v38 = vpop.eup %2704 }
0x203a   :  { %v1615_v39 = vadd.f32 1.0, %v2705_v38 }
0x203c   :  { %2706 = vrcp.f32 %v1615_v39 }
0x2046   :  { %v2707_v40 = vpop.eup %2706 }
0x2047   :  { %v1622_v44 = vmul.f32 %v2707_v40, %v1620_v43 }
0x20aa   :  { %v1625_v41 = vpop.permute.xlu1 %1624 }
0x20ab   :  { %v1627_v42 = vmul.f32 %v2707_v40, %v1625_v41 }
0x20ad   :  { %1629 = vrot.lane.b32.xlu0 %v1627_v42, %s2781_s20 }
0x211f   :  { %v1630_v45 = vpop.permute.xlu0 %1629 }
0x2120   :  { %v1632_v46 = vadd.f32 %v1630_v45, %v1622_v44 }
0x2122   :  { %2708 = vtanh.f32 %v1632_v46  ;;  %v1728_v61 = vrot.slane %v1632_v46, 6 }
0x212c   :  { %v2709_v34 = vpop.eup %2708 }
0x212d   :  { %1635 = vrot.lane.b32.xlu1 %v2709_v34, %s2780_s19 }
0x219f   :  { %v1636_v47 = vpop.permute.xlu1 %1635 }
0x21a0   :  { %v3111_v33 = vmul.f32 %v2707_v40, %v1636_v47 }
0x21a2   :  { %v1644_v48 = vrot.slane %v3111_v33, 6 }
0x21a4   :  { %1645 = vrot.lane.b32.xlu0 %v1644_v48, %s2781_s20 }
0x2216   :  { %v1646_v50 = vpop.permute.xlu0 %1645 }
0x2217   :  { %2451 = vmatmul.mubr.msk.f32.vlgmr.msra.gmra.mrb[14].mxu0 %vm156_vm2, %v1646_v50 }
0x2218   :  { %2596 = vmatpush3.bf16.msra.mxu0 %v3026_v28  ;;  %2472 = vmatprep.mubr.msk.f32.mxu0 %vm2778_vm1, %v2779_v23 }
0x2219   :  { %2597 = vmatprep.subr.bf16.mxu0 %v2777_v19 }
0x221c   :  { %2599 = vmatpush3.bf16.msra.mxu0 %v3032_v14 }
0x22ea   :  { %v1715_v51 = vpop.f32.mrb[14].mxu0 }
0x22eb   :  { %v1719_v52 = vadd.f32 %v1715_v51, %v3060_v30  ;;  %v2452_v53 = vpop.f32.mrb[15].mxu0 }
0x22ed   :  { %2710 = vtanh.f32 %v1719_v52  ;;  %v2165_v55 = vmul.f32 -1.442695, %v1719_v52 }
0x22ef   :  { %2712 = vpow2.f32 %v2165_v55 }
0x22f7   :  { %v2711_v54 = vpop.eup %2710 }
0x22f8   :  { %1732 = vrot.lane.b32.xlu1 %v2711_v54, %s2780_s19 }
0x22f9   :  { %v2713_v56 = vpop.eup %2712 }
0x22fa   :  { %v1723_v57 = vadd.f32 1.0, %v2713_v56 }
0x22fc   :  { %2714 = vrcp.f32 %v1723_v57 }
0x2306   :  { %v2715_v58 = vpop.eup %2714 }
0x2307   :  { %v1730_v62 = vmul.f32 %v2715_v58, %v1728_v61 }
0x236a   :  { %v1733_v59 = vpop.permute.xlu1 %1732 }
0x236b   :  { %v1735_v60 = vmul.f32 %v2715_v58, %v1733_v59 }
0x236d   :  { %1737 = vrot.lane.b32.xlu0 %v1735_v60, %s2781_s20 }
0x23df   :  { %v1738_v31 = vpop.permute.xlu0 %1737 }
0x23e0   :  { %v1740_v63 = vadd.f32 %v1738_v31, %v1730_v62 }
0x23e2   :  { %2716 = vtanh.f32 %v1740_v63 }
0x23ec   :  { %v2717_v0 = vpop.eup %2716 }
0x23ed   :  { %1743 = vrot.lane.b32.xlu1 %v2717_v0, %s2780_s19 }
0x245f   :  { %v1744_v1 = vpop.permute.xlu1 %1743 }
0x2460   :  { %v1746_v3 = vmul.f32 %v2715_v58, %v1744_v1 }
0x2462   :  { %1748 = vrot.lane.b32.xlu0 %v1746_v3, %s2781_s20 }
0x24d4   :  { %v1749_v4 = vpop.permute.xlu0 %1748 }
0x24d5   :  { %1751 = vst.msk [vmem:[#allocation2 + $0x8] sm:$0x3] %vm340_vm3, %v1749_v4  ;;  %2462 = vmatmul.mubr.msk.f32.vlgmr.msra.gmra.mrb[16].mxu1 %vm156_vm2, %v1749_v4 }
0x24d6   :  { %2602 = vmatpush3.bf16.msra.mxu1 %v3026_v28  ;;  %2483 = vmatprep.mubr.msk.f32.mxu1 %vm2778_vm1, %v2779_v23 }
0x24d7   :  { %2603 = vmatprep.subr.bf16.mxu1 %v2777_v19  ;;  %v1836_v19 = vrot.slane %v1740_v63, 6 }
0x24da   :  { %2605 = vmatpush3.bf16.msra.mxu1 %v3032_v14 }
0x25a8   :  { %v1820_v5 = vpop.f32.mrb[16].mxu1 }
0x25a9   :  { %v1825_v49 = vrot.slane %v1820_v5, 6  ;;  %v2463_v6 = vpop.f32.mrb[17].mxu1  ;;  %v2172_v5 = vld [vmem:[%s3185_s6] ss:$0 sm:$0xff] }
0x25ab   :  { %v1827_v7 = vadd.f32 %v1825_v49, %v3060_v30 }
0x25ad   :  { %2718 = vtanh.f32 %v1827_v7  ;;  %v2167_v9 = vmul.f32 -1.442695, %v1827_v7 }
0x25af   :  { %2720 = vpow2.f32 %v2167_v9 }
0x25b7   :  { %v2719_v8 = vpop.eup %2718 }
0x25b8   :  { %1840 = vrot.lane.b32.xlu1 %v2719_v8, %s2780_s19 }
0x25b9   :  { %v2721_v10 = vpop.eup %2720 }
0x25ba   :  { %v1831_v28 = vadd.f32 1.0, %v2721_v10 }
0x25bc   :  { %2722 = vrcp.f32 %v1831_v28  ;;  %v2173_v28 = vld [vmem:[#allocation3] ss:$0 sm:$0xff] }
0x25c6   :  { %v2723_v11 = vpop.eup %2722 }
0x25c7   :  { %v1838_v14 = vmul.f32 %v2723_v11, %v1836_v19 }
0x262a   :  { %v1841_v23 = vpop.permute.xlu1 %1840 }
0x262b   :  { %v1843_v12 = vmul.f32 %v2723_v11, %v1841_v23 }
0x262d   :  { %1845 = vrot.lane.b32.xlu0 %v1843_v12, %s2781_s20 }
0x269f   :  { %v1846_v18 = vpop.permute.xlu0 %1845 }
0x26a0   :  { %v1848_v13 = vadd.f32 %v1846_v18, %v1838_v14 }
0x26a2   :  { %2724 = vtanh.f32 %v1848_v13  ;;  %v1947_v40 = vrot.slane %v1848_v13, 6 }
0x26ac   :  { %v2725_v15 = vpop.eup %2724 }
0x26ad   :  { %1851 = vrot.lane.b32.xlu1 %v2725_v15, %s2780_s19 }
0x271f   :  { %v1852_v16 = vpop.permute.xlu1 %1851 }
0x2720   :  { %v3137_v22 = vmul.f32 %v2723_v11, %v1852_v16 }
0x2722   :  { %v1860_v17 = vrot.slane %v3137_v22, 2 }
0x2724   :  { %1861 = vrot.lane.b32.xlu0 %v1860_v17, %s2781_s20 }
0x2796   :  { %v1862_v20 = vpop.permute.xlu0 %1861 }
0x2797   :  { %2473 = vmatmul.mubr.msk.f32.vlgmr.msra.gmra.mrb[16].mxu0 %vm156_vm2, %v1862_v20 }
0x286a   :  { %v1931_v21 = vpop.f32.mrb[16].mxu0 }
0x286b   :  { %v1936_v25 = vrot.slane %v1931_v21, 4  ;;  %v2474_v26 = vpop.f32.mrb[17].mxu0 }
0x286d   :  { %v1938_v27 = vadd.f32 %v1936_v25, %v3060_v30 }
0x286f   :  { %2726 = vtanh.f32 %v1938_v27  ;;  %v2169_v32 = vmul.f32 -1.442695, %v1938_v27 }
0x2871   :  { %2728 = vpow2.f32 %v2169_v32 }
0x2879   :  { %v2727_v29 = vpop.eup %2726 }
0x287a   :  { %1951 = vrot.lane.b32.xlu1 %v2727_v29, %s2780_s19 }
0x287b   :  { %v2729_v35 = vpop.eup %2728 }
0x287c   :  { %v1942_v36 = vadd.f32 1.0, %v2729_v35 }
0x287e   :  { %2730 = vrcp.f32 %v1942_v36 }
0x2888   :  { %v2731_v37 = vpop.eup %2730 }
0x2889   :  { %v1949_v41 = vmul.f32 %v2731_v37, %v1947_v40 }
0x28ec   :  { %v1952_v38 = vpop.permute.xlu1 %1951 }
0x28ed   :  { %v1954_v39 = vmul.f32 %v2731_v37, %v1952_v38 }
0x28ef   :  { %1956 = vrot.lane.b32.xlu0 %v1954_v39, %s2781_s20 }
0x2961   :  { %v1957_v42 = vpop.permute.xlu0 %1956 }
0x2962   :  { %v1959_v43 = vadd.f32 %v1957_v42, %v1949_v41 }
0x2964   :  { %2732 = vtanh.f32 %v1959_v43 }
0x296e   :  { %v2733_v44 = vpop.eup %2732 }
0x296f   :  { %1962 = vrot.lane.b32.xlu1 %v2733_v44, %s2780_s19 }
0x29e1   :  { %v1963_v45 = vpop.permute.xlu1 %1962 }
0x29e2   :  { %v1965_v46 = vmul.f32 %v2731_v37, %v1963_v45 }
0x29e4   :  { %v1971_v34 = vrot.slane %v1965_v46, 4 }
0x29e6   :  { %1972 = vrot.lane.b32.xlu0 %v1971_v34, %s2781_s20 }
0x2a58   :  { %v1973_v47 = vpop.permute.xlu0 %1972 }
0x2a59   :  { %2484 = vmatmul.mubr.msk.f32.vlgmr.msra.gmra.mrb[18].mxu1 %vm156_vm2, %v1973_v47 }
0x2b2c   :  { %v2042_v48 = vpop.f32.mrb[18].mxu1 }
0x2b2d   :  { %v2047_v50 = vrot.slane %v2042_v48, 2  ;;  %v2485_v51 = vpop.f32.mrb[19].mxu1 }
0x2b2f   :  { %v2049_v52 = vadd.f32 %v2047_v50, %v3060_v30  ;;  %v2058_v30 = vrot.slane %v1959_v43, 6 }
0x2b31   :  { %2734 = vtanh.f32 %v2049_v52  ;;  %v2171_v54 = vmul.f32 -1.442695, %v2049_v52 }
0x2b33   :  { %2736 = vpow2.f32 %v2171_v54 }
0x2b3b   :  { %v2735_v53 = vpop.eup %2734 }
0x2b3c   :  { %2062 = vrot.lane.b32.xlu1 %v2735_v53, %s2780_s19 }
0x2b3d   :  { %v2737_v55 = vpop.eup %2736 }
0x2b3e   :  { %v2053_v56 = vadd.f32 1.0, %v2737_v55 }
0x2b40   :  { %2738 = vrcp.f32 %v2053_v56 }
0x2b4a   :  { %v2739_v57 = vpop.eup %2738 }
0x2b4b   :  { %v2060_v60 = vmul.f32 %v2739_v57, %v2058_v30 }
0x2bae   :  { %v2063_v58 = vpop.permute.xlu1 %2062 }
0x2baf   :  { %v2065_v59 = vmul.f32 %v2739_v57, %v2063_v58 }
0x2bb1   :  { %2067 = vrot.lane.b32.xlu0 %v2065_v59, %s2781_s20 }
0x2bb5   :  { %1418 = vrot.lane.b32.xlu0 %v3081_v2, %s2781_s20 }
0x2bb9   :  { %1640 = vrot.lane.b32.xlu0 %v3111_v33, %s2781_s20 }
0x2bbd   :  { %1967 = vrot.lane.b32.xlu0 %v1965_v46, %s2781_s20 }
0x2c23   :  { %v2068_v61 = vpop.permute.xlu0 %2067 }
0x2c24   :  { %v2070_v62 = vadd.f32 %v2068_v61, %v2060_v60 }
0x2c26   :  { %2740 = vtanh.f32 %v2070_v62 }
0x2c27   :  { %v1419_v31 = vpop.permute.xlu0 %1418 }
0x2c28   :  { %1421 = vst.msk [vmem:[#allocation2] sm:$0xc] %vm449_vm4, %v1419_v31 }
0x2c2b   :  { %v1641_v63 = vpop.permute.xlu0 %1640 }
0x2c2c   :  { %1643 = vst.msk [vmem:[#allocation2] sm:$0xc0] %vm673_vm5, %v1641_v63 }
0x2c2f   :  { %v1968_v0 = vpop.permute.xlu0 %1967 }
0x2c30   :  { %v2741_v1 = vpop.eup %2740  ;;  %1970 = vst.msk [vmem:[#allocation2 + $0x8] sm:$0x30] %vm561_vm6, %v1968_v0 }
0x2c31   :  { %2073 = vrot.lane.b32.xlu1 %v2741_v1, %s2780_s19 }
0x2c35   :  { %1529 = vrot.lane.b32.xlu1 %v3096_v24, %s2781_s20 }
0x2c39   :  { %1856 = vrot.lane.b32.xlu1 %v3137_v22, %s2781_s20 }
0x2ca3   :  { %v2074_v2 = vpop.permute.xlu1 %2073 }
0x2ca4   :  { %v2076_v33 = vmul.f32 %v2739_v57, %v2074_v2 }
0x2ca6   :  { %2078 = vrot.lane.b32.xlu1 %v2076_v33, %s2781_s20 }
0x2ca7   :  { %v1530_v3 = vpop.permute.xlu1 %1529 }
0x2ca8   :  { %1532 = vst.msk [vmem:[#allocation2] sm:$0x30] %vm561_vm6, %v1530_v3 }
0x2cab   :  { %v1857_v4 = vpop.permute.xlu1 %1856 }
0x2cac   :  { %1859 = vst.msk [vmem:[#allocation2 + $0x8] sm:$0xc] %vm449_vm4, %v1857_v4 }
0x2caf   :  { %v2082_v49 = vld [vmem:[#allocation2] sm:$0xff] }
0x2cb0   :  { %v2091_v6 = vmul.f32 %v2172_v5, %v2082_v49 }
0x2cb2   :  { %v2093_v24 = vsel %vm156_vm2, %v2091_v6, 0.0 }
0x2cb3   :  { %2094 = vadd.xlane.f32.xlu0 %v2093_v24 }
0x2d18   :  { %v2079_v7 = vpop.permute.xlu1 %2078 }
0x2d19   :  { %2081 = vst.msk [vmem:[#allocation2 + $0x8] sm:$0xc0] %vm673_vm5, %v2079_v7 }
0x2d20   :  { %v2083_v8 = vld [vmem:[#allocation2 + $0x8] sm:$0xff] }
0x2d21   :  { %v2092_v9 = vmul.f32 %v2172_v5, %v2083_v8 }
0x2d23   :  { %v2096_v10 = vsel %vm156_vm2, %v2092_v9, 0.0 }
0x2d24   :  { %2097 = vadd.xlane.f32.xlu1 %v2096_v10 }
0x2d40   :  { %v2095_v11 = vpop.xlane.xlu0 %2094 }
0x2d41   :  { %v2106_v23 = vadd.f32 %v2173_v28, %v2095_v11 }
0x2d43   :  { %v2174_v12 = vmul.f32 -1.442695, %v2106_v23 }
0x2d45   :  { %2742 = vpow2.f32 %v2174_v12 }
0x2d4f   :  { %v2743_v19 = vpop.eup %2742 }
0x2d50   :  { %v2114_v14 = vadd.f32 1.0, %v2743_v19 }
0x2d52   :  { %2744 = vrcp.f32 %v2114_v14 }
0x2d5c   :  { %v2745_v18 = vpop.eup %2744 }
0x2d5d   :  { %2121 = vst.msk [vmem:[%s3187_s8] sm:$0xff] %vm2120_vm7, %v2745_v18 }
0x2db1   :  { %v2098_v13 = vpop.xlane.xlu1 %2097 }
0x2db2   :  { %v2107_v15 = vadd.f32 %v2173_v28, %v2098_v13 }
0x2db4   :  { %v2175_v16 = vmul.f32 -1.442695, %v2107_v15 }
0x2db6   :  { %2746 = vpow2.f32 %v2175_v16 }
0x2dc0   :  { %v2747_v22 = vpop.eup %2746 }
0x2dc1   :  { %v2115_v17 = vadd.f32 1.0, %v2747_v22 }
0x2dc3   :  { %2748 = vrcp.f32 %v2115_v17 }
0x2dcd   :  { %v2749_v20 = vpop.eup %2748 }
0x2dce   :  { %2122 = vst.msk [vmem:[%s3187_s8 + $0x8] sm:$0xff] %vm2120_vm7, %v2749_v20 }
0x2dcf   :  { %2127 = vsyncpa [#allocation5], 1 }

</bundles_post_ra>
